<compile_context>
chip_gen: v7x
topology: tpu7x:2x2x1
jax: 0.10.0
libtpu: 0.0.40
codegen_flags: <defaults>
</compile_context>

<pallas_src>
import functools
import math

import jax
import jax.numpy as jnp
import numpy as np
from jax.experimental import pallas as pl
from jax.experimental.pallas import tpu as pltpu


def _cross_attn_kernel(tgt_ref, qpos_ref, mem_ref, pos_ref,
                       wq_ref, wk_ref, wv_ref,
                       bq_ref, bk_ref, bv_ref,
                       woh_ref, bo_ref, gamma_ref, beta_ref,
                       out_ref,
                       q_scr, m_scr, l_scr, acc_scr,
                       *, nhead: int, eps: float, compute_dtype):
    """Grid = (batch, S_chunks): one batch element per step on axis 0,
    flash-style online-softmax accumulation over memory chunks on axis 1."""
    s_idx = pl.program_id(1)
    L, E = tgt_ref.shape
    head_dim = E // nhead

    @pl.when(s_idx == 0)
    def _init():
        # Q projection once per batch element (scale already folded into wq/bq).
        q_in = tgt_ref[...] + qpos_ref[...]                                   # (L, E)
        q_t = jnp.einsum("fe,le->fl", wq_ref[...], q_in,
                         preferred_element_type=jnp.float32) + bq_ref[...]    # (E, L)
        q_h = q_t.reshape(nhead, head_dim, L)        # sublane-group split (layout-free)
        q_scr[...] = jnp.transpose(q_h, (0, 2, 1)).astype(q_scr.dtype)        # (H, L, Dh)
        m_scr[...] = jnp.full_like(m_scr, -jnp.inf)
        l_scr[...] = jnp.zeros_like(l_scr)
        acc_scr[...] = jnp.zeros_like(acc_scr)

    # K / V projections for this memory chunk (features on sublanes).
    mem = mem_ref[...]                                                        # (Sc, E)
    k_in = mem + pos_ref[...]
    k_t = (jnp.einsum("fe,se->fs", wk_ref[...], k_in,
                      preferred_element_type=jnp.float32)
           + bk_ref[...]).astype(compute_dtype)                               # (E, Sc)
    v_t = (jnp.einsum("fe,se->fs", wv_ref[...], mem,
                      preferred_element_type=jnp.float32)
           + bv_ref[...]).astype(compute_dtype)                               # (E, Sc)
    k_h = k_t.reshape(nhead, head_dim, -1)                                    # (H, Dh, Sc)
    v_h = v_t.reshape(nhead, head_dim, -1)                                    # (H, Dh, Sc)

    # Batched-over-heads scores for this chunk: one dot_general, f32 accumulate.
    s_hls = jnp.einsum("hld,hds->hls", q_scr[...], k_h,
                       preferred_element_type=jnp.float32)                    # (H, L, Sc)

    # Online softmax update (statistics in f32).
    m_prev = m_scr[...]
    m_new = jnp.maximum(m_prev, jnp.max(s_hls, axis=-1, keepdims=True))
    alpha = jnp.exp(m_prev - m_new)
    p = jnp.exp(s_hls - m_new)
    l_scr[...] = alpha * l_scr[...] + jnp.sum(p, axis=-1, keepdims=True)
    pv = jnp.einsum("hls,hds->hld", p.astype(compute_dtype), v_h,
                    preferred_element_type=jnp.float32)                       # (H, L, Dh)
    acc_scr[...] = alpha * acc_scr[...] + pv
    m_scr[...] = m_new

    @pl.when(s_idx == pl.num_programs(1) - 1)
    def _finalize():
        inv_l = pl.reciprocal(l_scr[...], approx=False)           # EUP, off the VALU path
        o = acc_scr[...] * inv_l                                  # (H, L, Dh) f32
        # Output projection: sum_h o_h @ woh_h  with woh[h] = wo[:, h*Dh:(h+1)*Dh].T
        part = jnp.einsum("hld,hdf->hlf", o, woh_ref[...],
                          preferred_element_type=jnp.float32)     # (H, L, E)
        tgt2 = jnp.sum(part, axis=0) + bo_ref[...]                # (L, E)
        # Residual + LayerNorm (f32 statistics).
        y = tgt_ref[...].astype(jnp.float32) + tgt2
        mean = jnp.mean(y, axis=-1, keepdims=True)
        var = jnp.mean(jnp.square(y - mean), axis=-1, keepdims=True)
        y_n = (y - mean) * jax.lax.rsqrt(var + eps)
        out_ref[...] = (y_n * gamma_ref[...] + beta_ref[...]).astype(out_ref.dtype)


def _pick_block_s(S: int, target: int = 512) -> int:
    if S <= target:
        return S
    for c in range(target, 7, -1):
        if S % c == 0 and c % 8 == 0:
            return c
    return S  # TODO(synk): pad/mask ragged memory lengths instead of full-S fallback.


def cross_attention_layer(tgt, memory, params, *, nhead,
                          pos=None, query_pos=None, eps=1e-5, block_s=None):
    """forward_post of CrossAttentionLayer.  tgt: (L, N, E), memory: (S, N, E)."""
    L, N, E = tgt.shape
    S = memory.shape[0]
    assert E % nhead == 0, "d_model must be divisible by nhead"
    head_dim = E // nhead
    scale = 1.0 / math.sqrt(head_dim)

    if query_pos is None:
        query_pos = jnp.zeros_like(tgt)
    if pos is None:
        pos = jnp.zeros_like(memory)

    if block_s is None:
        block_s = _pick_block_s(S)
    assert S % block_s == 0, "block_s must divide the memory length"
    assert block_s == S or block_s % 8 == 0, "block_s must be a multiple of 8 (or S)"

    wq, wk, wv = params["wq"], params["wk"], params["wv"]
    bq, bk, bv = params["bq"], params["bk"], params["bv"]
    wo, bo = params["wo"], params["bo"]
    gamma, beta = params["ln_gamma"], params["ln_beta"]

    # Fold the 1/sqrt(head_dim) attention scale into the Q projection (host-side).
    wq_s = wq * scale
    bq_s = (bq * scale).reshape(E, 1)
    bk_c = bk.reshape(E, 1)
    bv_c = bv.reshape(E, 1)
    # Per-head output-projection weights: woh[h, d, f] = wo[f, h*Dh + d].
    woh = jnp.transpose(wo).reshape(nhead, head_dim, E)
    bo_c = bo.reshape(1, E)
    gamma_c = gamma.reshape(1, E)
    beta_c = beta.reshape(1, E)

    compute_dtype = tgt.dtype  # MXU feed dtype for attention operands

    if E % 128 == 0:
        # Lane-blocked view of the seq-first layout: reshape is copy-free, each
        # grid step DMAs one batch element's (L, E) / (Sc, E) slab directly.
        tgt_in = tgt.reshape(L, N * E)
        qpos_in = query_pos.reshape(L, N * E)
        mem_in = memory.reshape(S, N * E)
        pos_in = pos.reshape(S, N * E)
        tgt_spec = pl.BlockSpec((L, E), lambda b, s: (0, b))
        mem_spec = pl.BlockSpec((block_s, E), lambda b, s: (s, b))
        out_shape = jax.ShapeDtypeStruct((L, N * E), tgt.dtype)
        out_spec = pl.BlockSpec((L, E), lambda b, s: (0, b))
        post = lambda o: o.reshape(L, N, E)
    else:
        # Fallback for d_model not a multiple of 128: batch-major copies.
        tgt_in = jnp.transpose(tgt, (1, 0, 2))
        qpos_in = jnp.transpose(query_pos, (1, 0, 2))
        mem_in = jnp.transpose(memory, (1, 0, 2))
        pos_in = jnp.transpose(pos, (1, 0, 2))
        tgt_spec = pl.BlockSpec((None, L, E), lambda b, s: (b, 0, 0))
        mem_spec = pl.BlockSpec((None, block_s, E), lambda b, s: (b, s, 0))
        out_shape = jax.ShapeDtypeStruct((N, L, E), tgt.dtype)
        out_spec = pl.BlockSpec((None, L, E), lambda b, s: (b, 0, 0))
        post = lambda o: jnp.transpose(o, (1, 0, 2))

    mat_spec = pl.BlockSpec((E, E), lambda b, s: (0, 0))
    col_spec = pl.BlockSpec((E, 1), lambda b, s: (0, 0))
    row_spec = pl.BlockSpec((1, E), lambda b, s: (0, 0))
    woh_spec = pl.BlockSpec((nhead, head_dim, E), lambda b, s: (0, 0, 0))

    kernel = functools.partial(_cross_attn_kernel, nhead=nhead, eps=eps,
                               compute_dtype=compute_dtype)

    out = pl.pallas_call(
        kernel,
        out_shape=out_shape,
        grid_spec=pltpu.PrefetchScalarGridSpec(
            num_scalar_prefetch=0,
            grid=(N, S // block_s),
            in_specs=[
                tgt_spec, tgt_spec, mem_spec, mem_spec,
                mat_spec, mat_spec, mat_spec,
                col_spec, col_spec, col_spec,
                woh_spec, row_spec,
                row_spec, row_spec,
            ],
            out_specs=out_spec,
            scratch_shapes=[
                pltpu.VMEM((nhead, L, head_dim), compute_dtype),  # q (scaled, per-head)
                pltpu.VMEM((nhead, L, 1), jnp.float32),           # m (running max)
                pltpu.VMEM((nhead, L, 1), jnp.float32),           # l (running denom)
                pltpu.VMEM((nhead, L, head_dim), jnp.float32),    # acc (running PV)
            ]),
        compiler_params=pltpu.CompilerParams(
            dimension_semantics=("parallel", "arbitrary")),
    )(tgt_in, qpos_in, mem_in, pos_in,
      wq_s, wk, wv, bq_s, bk_c, bv_c, woh, bo_c, gamma_c, beta_c)

    return post(out)


def init_params(key, d_model):
    """Synthetic init matching nn.MultiheadAttention / LayerNorm parameter shapes.
    Weights with dim > 1 get xavier_uniform (as in _reset_parameters)."""
    k_in, k_out = jax.random.split(key)

    def xavier(k, shape):
        fan_out, fan_in = shape
        bound = math.sqrt(6.0 / (fan_in + fan_out))
        return jax.random.uniform(k, shape, jnp.float32, -bound, bound)

    in_proj_w = xavier(k_in, (3 * d_model, d_model))
    wq, wk, wv = jnp.split(in_proj_w, 3, axis=0)
    zeros = jnp.zeros((d_model,), jnp.float32)
    return {
        "wq": wq, "wk": wk, "wv": wv,
        "bq": zeros, "bk": zeros, "bv": zeros,
        "wo": xavier(k_out, (d_model, d_model)),
        "bo": zeros,
        "ln_gamma": jnp.ones((d_model,), jnp.float32),
        "ln_beta": zeros,
    }


def _reference(tgt, memory, params, nhead, pos, query_pos, eps=1e-5):
    """Pure-JAX reference of forward_post for verification."""
    L, N, E = tgt.shape
    Dh = E // nhead
    q_in = tgt + query_pos
    k_in = memory + pos
    q = jnp.einsum("lne,fe->lnf", q_in, params["wq"]) + params["bq"]
    k = jnp.einsum("sne,fe->snf", k_in, params["wk"]) + params["bk"]
    v = jnp.einsum("sne,fe->snf", memory, params["wv"]) + params["bv"]
    q = q.reshape(L, N, nhead, Dh) / math.sqrt(Dh)
    k = k.reshape(-1, N, nhead, Dh)
    v = v.reshape(-1, N, nhead, Dh)
    s = jnp.einsum("lnhd,snhd->nhls", q, k)
    p = jax.nn.softmax(s, axis=-1)
    o = jnp.einsum("nhls,snhd->lnhd", p, v).reshape(L, N, E)
    tgt2 = jnp.einsum("lne,fe->lnf", o, params["wo"]) + params["bo"]
    y = tgt + tgt2
    mean = y.mean(-1, keepdims=True)
    var = ((y - mean) ** 2).mean(-1, keepdims=True)
    return (y - mean) * jax.lax.rsqrt(var + eps) * params["ln_gamma"] + params["ln_beta"]


if __name__ == "__main__":
    d_model, nhead = 128, 4          # head_dim = 32 (same head_dim as Mask2Former 256/8)
    L, S, N = 16, 64, 2              # queries, memory tokens, batch

    key = jax.random.PRNGKey(0)
    k1, k2, k3, k4, k5 = jax.random.split(key, 5)
    tgt = jax.random.normal(k1, (L, N, d_model), jnp.float32)
    memory = jax.random.normal(k2, (S, N, d_model), jnp.float32)
    pos = jax.random.normal(k3, (S, N, d_model), jnp.float32)
    query_pos = jax.random.normal(k4, (L, N, d_model), jnp.float32)
    params = init_params(k5, d_model)

    # block_s=32 -> two memory chunks per batch element, exercising the online softmax.
    out = cross_attention_layer(tgt, memory, params, nhead=nhead,
                                pos=pos, query_pos=query_pos, block_s=32)
    out = jax.block_until_ready(out)

    ref = _reference(tgt, memory, params, nhead, pos, query_pos)
    np.testing.assert_allclose(np.asarray(out), np.asarray(ref), atol=5e-4, rtol=5e-4)

    print("KERNEL_OK")
</pallas_src>

<mosaic_0001>
module attributes {stable_mosaic.version = 11 : i64} {
  func.func @_cross_attn_kernel(%arg0: i32, %arg1: i32, %arg2: memref<16x128xf32, #tpu.memory_space<vmem>>, %arg3: memref<16x128xf32, #tpu.memory_space<vmem>>, %arg4: memref<32x128xf32, #tpu.memory_space<vmem>>, %arg5: memref<32x128xf32, #tpu.memory_space<vmem>>, %arg6: memref<128x128xf32, #tpu.memory_space<vmem>>, %arg7: memref<128x128xf32, #tpu.memory_space<vmem>>, %arg8: memref<128x128xf32, #tpu.memory_space<vmem>>, %arg9: memref<128x1xf32, #tpu.memory_space<vmem>>, %arg10: memref<128x1xf32, #tpu.memory_space<vmem>>, %arg11: memref<128x1xf32, #tpu.memory_space<vmem>>, %arg12: memref<4x32x128xf32, #tpu.memory_space<vmem>>, %arg13: memref<1x128xf32, #tpu.memory_space<vmem>>, %arg14: memref<1x128xf32, #tpu.memory_space<vmem>>, %arg15: memref<1x128xf32, #tpu.memory_space<vmem>>, %arg16: memref<16x128xf32, #tpu.memory_space<vmem>>, %arg17: memref<4x16x32xf32, #tpu.memory_space<vmem>>, %arg18: memref<4x16x1xf32, #tpu.memory_space<vmem>>, %arg19: memref<4x16x1xf32, #tpu.memory_space<vmem>>, %arg20: memref<4x16x32xf32, #tpu.memory_space<vmem>>) attributes {dimension_semantics = [#tpu.dimension_semantics<parallel>, #tpu.dimension_semantics<arbitrary>], iteration_bounds = array<i64: 2, 2>, scalar_prefetch = 0 : i64, scratch_operands = 4 : i64, tpu.core_type = #tpu.core_type<tc>, window_params = [{transform_indices = @transform_0, window_bounds = array<i64: 16, 128>}, {transform_indices = @transform_1, window_bounds = array<i64: 16, 128>}, {transform_indices = @transform_2, window_bounds = array<i64: 32, 128>}, {transform_indices = @transform_3, window_bounds = array<i64: 32, 128>}, {pipeline_mode = #tpu.pipeline_mode<synchronous>, transform_indices = @transform_4, window_bounds = array<i64: 128, 128>}, {pipeline_mode = #tpu.pipeline_mode<synchronous>, transform_indices = @transform_5, window_bounds = array<i64: 128, 128>}, {pipeline_mode = #tpu.pipeline_mode<synchronous>, transform_indices = @transform_6, window_bounds = array<i64: 128, 128>}, {pipeline_mode = #tpu.pipeline_mode<synchronous>, transform_indices = @transform_7, window_bounds = array<i64: 128, 1>}, {pipeline_mode = #tpu.pipeline_mode<synchronous>, transform_indices = @transform_8, window_bounds = array<i64: 128, 1>}, {pipeline_mode = #tpu.pipeline_mode<synchronous>, transform_indices = @transform_9, window_bounds = array<i64: 128, 1>}, {pipeline_mode = #tpu.pipeline_mode<synchronous>, transform_indices = @transform_10, window_bounds = array<i64: 4, 32, 128>}, {pipeline_mode = #tpu.pipeline_mode<synchronous>, transform_indices = @transform_11, window_bounds = array<i64: 1, 128>}, {pipeline_mode = #tpu.pipeline_mode<synchronous>, transform_indices = @transform_12, window_bounds = array<i64: 1, 128>}, {pipeline_mode = #tpu.pipeline_mode<synchronous>, transform_indices = @transform_13, window_bounds = array<i64: 1, 128>}, {transform_indices = @transform_14, window_bounds = array<i64: 16, 128>}]} {
    %c0_i32 = arith.constant 0 : i32
    %0 = arith.cmpi eq, %arg1, %c0_i32 : i32
    %1 = arith.extui %0 : i1 to i32
    %c0_i32_0 = arith.constant 0 : i32
    %2 = arith.cmpi ne, %1, %c0_i32_0 : i32
    scf.if %2 {
      %c0_39 = arith.constant 0 : index
      %c0_40 = arith.constant 0 : index
      %45 = vector.load %arg2[%c0_39, %c0_40] : memref<16x128xf32, #tpu.memory_space<vmem>>, vector<16x128xf32>
      %c0_41 = arith.constant 0 : index
      %c0_42 = arith.constant 0 : index
      %46 = vector.load %arg3[%c0_41, %c0_42] : memref<16x128xf32, #tpu.memory_space<vmem>>, vector<16x128xf32>
      %47 = arith.addf %45, %46 : vector<16x128xf32>
      %c0_43 = arith.constant 0 : index
      %c0_44 = arith.constant 0 : index
      %48 = vector.load %arg6[%c0_43, %c0_44] : memref<128x128xf32, #tpu.memory_space<vmem>>, vector<128x128xf32>
      "tpu.trace_start"() <{level = 10 : i32, message = "fe,le->fl"}> : () -> ()
      %cst_45 = arith.constant dense<0.000000e+00> : vector<128x16xf32>
      %49 = tpu.matmul %48, %47, %cst_45 {dimension_numbers = #tpu.dot_dimension_numbers<[1], [1], [0], [0], [0, 0, 1, 0], [], []>} : vector<128x128xf32>, vector<16x128xf32>, vector<128x16xf32> -> vector<128x16xf32>
      "tpu.trace_stop"() : () -> ()
      %c0_46 = arith.constant 0 : index
      %c0_47 = arith.constant 0 : index
      %50 = vector.load %arg9[%c0_46, %c0_47] : memref<128x1xf32, #tpu.memory_space<vmem>>, vector<128x1xf32>
      %51 = vector.broadcast %50 : vector<128x1xf32> to vector<128x16xf32>
      %52 = arith.addf %49, %51 : vector<128x16xf32>
      %53 = vector.shape_cast %52 : vector<128x16xf32> to vector<4x32x16xf32>
      %54 = tpu.transpose %53, [0, 2, 1] : vector<4x32x16xf32> -> vector<4x16x32xf32>
      %c0_48 = arith.constant 0 : index
      %c0_49 = arith.constant 0 : index
      %c0_50 = arith.constant 0 : index
      %55 = vector.load %arg17[%c0_48, %c0_49, %c0_50] : memref<4x16x32xf32, #tpu.memory_space<vmem>>, vector<4x16x32xf32>
      tpu.vector_store %arg17[%c0_48, %c0_49, %c0_50], %54 {strides = array<i32>} : memref<4x16x32xf32, #tpu.memory_space<vmem>>, vector<4x16x32xf32>,
      %cst_51 = arith.constant 0xFF800000 : f32
      %56 = vector.broadcast %cst_51 : f32 to vector<4x16x1xf32>
      %c0_52 = arith.constant 0 : index
      %c0_53 = arith.constant 0 : index
      %c0_54 = arith.constant 0 : index
      %57 = vector.load %arg18[%c0_52, %c0_53, %c0_54] : memref<4x16x1xf32, #tpu.memory_space<vmem>>, vector<4x16x1xf32>
      tpu.vector_store %arg18[%c0_52, %c0_53, %c0_54], %56 {strides = array<i32>} : memref<4x16x1xf32, #tpu.memory_space<vmem>>, vector<4x16x1xf32>,
      %cst_55 = arith.constant 0.000000e+00 : f32
      %58 = vector.broadcast %cst_55 : f32 to vector<4x16x1xf32>
      %c0_56 = arith.constant 0 : index
      %c0_57 = arith.constant 0 : index
      %c0_58 = arith.constant 0 : index
      %59 = vector.load %arg19[%c0_56, %c0_57, %c0_58] : memref<4x16x1xf32, #tpu.memory_space<vmem>>, vector<4x16x1xf32>
      tpu.vector_store %arg19[%c0_56, %c0_57, %c0_58], %58 {strides = array<i32>} : memref<4x16x1xf32, #tpu.memory_space<vmem>>, vector<4x16x1xf32>,
      %cst_59 = arith.constant 0.000000e+00 : f32
      %60 = vector.broadcast %cst_59 : f32 to vector<4x16x32xf32>
      %c0_60 = arith.constant 0 : index
      %c0_61 = arith.constant 0 : index
      %c0_62 = arith.constant 0 : index
      %61 = vector.load %arg20[%c0_60, %c0_61, %c0_62] : memref<4x16x32xf32, #tpu.memory_space<vmem>>, vector<4x16x32xf32>
      tpu.vector_store %arg20[%c0_60, %c0_61, %c0_62], %60 {strides = array<i32>} : memref<4x16x32xf32, #tpu.memory_space<vmem>>, vector<4x16x32xf32>,
    } else {
    }
    %c0 = arith.constant 0 : index
    %c0_1 = arith.constant 0 : index
    %3 = vector.load %arg4[%c0, %c0_1] : memref<32x128xf32, #tpu.memory_space<vmem>>, vector<32x128xf32>
    %c0_2 = arith.constant 0 : index
    %c0_3 = arith.constant 0 : index
    %4 = vector.load %arg5[%c0_2, %c0_3] : memref<32x128xf32, #tpu.memory_space<vmem>>, vector<32x128xf32>
    %5 = arith.addf %3, %4 : vector<32x128xf32>
    %c0_4 = arith.constant 0 : index
    %c0_5 = arith.constant 0 : index
    %6 = vector.load %arg7[%c0_4, %c0_5] : memref<128x128xf32, #tpu.memory_space<vmem>>, vector<128x128xf32>
    "tpu.trace_start"() <{level = 10 : i32, message = "fe,se->fs"}> : () -> ()
    %cst = arith.constant dense<0.000000e+00> : vector<128x32xf32>
    %7 = tpu.matmul %6, %5, %cst {dimension_numbers = #tpu.dot_dimension_numbers<[1], [1], [0], [0], [0, 0, 1, 0], [], []>} : vector<128x128xf32>, vector<32x128xf32>, vector<128x32xf32> -> vector<128x32xf32>
    "tpu.trace_stop"() : () -> ()
    %c0_6 = arith.constant 0 : index
    %c0_7 = arith.constant 0 : index
    %8 = vector.load %arg10[%c0_6, %c0_7] : memref<128x1xf32, #tpu.memory_space<vmem>>, vector<128x1xf32>
    %9 = vector.broadcast %8 : vector<128x1xf32> to vector<128x32xf32>
    %10 = arith.addf %7, %9 : vector<128x32xf32>
    %c0_8 = arith.constant 0 : index
    %c0_9 = arith.constant 0 : index
    %11 = vector.load %arg8[%c0_8, %c0_9] : memref<128x128xf32, #tpu.memory_space<vmem>>, vector<128x128xf32>
    "tpu.trace_start"() <{level = 10 : i32, message = "fe,se->fs"}> : () -> ()
    %cst_10 = arith.constant dense<0.000000e+00> : vector<128x32xf32>
    %12 = tpu.matmul %11, %3, %cst_10 {dimension_numbers = #tpu.dot_dimension_numbers<[1], [1], [0], [0], [0, 0, 1, 0], [], []>} : vector<128x128xf32>, vector<32x128xf32>, vector<128x32xf32> -> vector<128x32xf32>
    "tpu.trace_stop"() : () -> ()
    %c0_11 = arith.constant 0 : index
    %c0_12 = arith.constant 0 : index
    %13 = vector.load %arg11[%c0_11, %c0_12] : memref<128x1xf32, #tpu.memory_space<vmem>>, vector<128x1xf32>
    %14 = vector.broadcast %13 : vector<128x1xf32> to vector<128x32xf32>
    %15 = arith.addf %12, %14 : vector<128x32xf32>
    %16 = vector.shape_cast %10 : vector<128x32xf32> to vector<4x32x32xf32>
    %17 = vector.shape_cast %15 : vector<128x32xf32> to vector<4x32x32xf32>
    %c0_13 = arith.constant 0 : index
    %c0_14 = arith.constant 0 : index
    %c0_15 = arith.constant 0 : index
    %18 = vector.load %arg17[%c0_13, %c0_14, %c0_15] : memref<4x16x32xf32, #tpu.memory_space<vmem>>, vector<4x16x32xf32>
    "tpu.trace_start"() <{level = 10 : i32, message = "hld,hds->hls"}> : () -> ()
    %cst_16 = arith.constant dense<0.000000e+00> : vector<4x16x32xf32>
    %19 = tpu.matmul %18, %16, %cst_16 {dimension_numbers = #tpu.dot_dimension_numbers<[2], [1], [1], [2], [0, 0, 0, 1, 1, 2], [0], [0]>} : vector<4x16x32xf32>, vector<4x32x32xf32>, vector<4x16x32xf32> -> vector<4x16x32xf32>
    "tpu.trace_stop"() : () -> ()
    %c0_17 = arith.constant 0 : index
    %c0_18 = arith.constant 0 : index
    %c0_19 = arith.constant 0 : index
    %20 = vector.load %arg18[%c0_17, %c0_18, %c0_19] : memref<4x16x1xf32, #tpu.memory_space<vmem>>, vector<4x16x1xf32>
    %cst_20 = arith.constant dense<0xFF800000> : vector<4x16xf32>
    %21 = vector.multi_reduction <maximumf>, %19, %cst_20 [2] : vector<4x16x32xf32> to vector<4x16xf32>
    %22 = vector.shape_cast %21 : vector<4x16xf32> to vector<4x16x1xf32>
    %23 = arith.maximumf %20, %22 : vector<4x16x1xf32>
    %24 = arith.subf %20, %23 : vector<4x16x1xf32>
    %25 = math.exp %24 : vector<4x16x1xf32>
    %26 = vector.broadcast %23 : vector<4x16x1xf32> to vector<4x16x32xf32>
    %27 = arith.subf %19, %26 : vector<4x16x32xf32>
    %28 = math.exp %27 : vector<4x16x32xf32>
    %c0_21 = arith.constant 0 : index
    %c0_22 = arith.constant 0 : index
    %c0_23 = arith.constant 0 : index
    %29 = vector.load %arg19[%c0_21, %c0_22, %c0_23] : memref<4x16x1xf32, #tpu.memory_space<vmem>>, vector<4x16x1xf32>
    %30 = arith.mulf %25, %29 : vector<4x16x1xf32>
    %cst_24 = arith.constant dense<0.000000e+00> : vector<4x16xf32>
    %31 = vector.multi_reduction <add>, %28, %cst_24 [2] : vector<4x16x32xf32> to vector<4x16xf32>
    %32 = vector.shape_cast %31 : vector<4x16xf32> to vector<4x16x1xf32>
    %33 = arith.addf %30, %32 : vector<4x16x1xf32>
    %c0_25 = arith.constant 0 : index
    %c0_26 = arith.constant 0 : index
    %c0_27 = arith.constant 0 : index
    %34 = vector.load %arg19[%c0_25, %c0_26, %c0_27] : memref<4x16x1xf32, #tpu.memory_space<vmem>>, vector<4x16x1xf32>
    tpu.vector_store %arg19[%c0_25, %c0_26, %c0_27], %33 {strides = array<i32>} : memref<4x16x1xf32, #tpu.memory_space<vmem>>, vector<4x16x1xf32>,
    "tpu.trace_start"() <{level = 10 : i32, message = "hls,hds->hld"}> : () -> ()
    %cst_28 = arith.constant dense<0.000000e+00> : vector<4x16x32xf32>
    %35 = tpu.matmul %28, %17, %cst_28 {dimension_numbers = #tpu.dot_dimension_numbers<[2], [2], [1], [1], [0, 0, 0, 1, 1, 1], [0], [0]>} : vector<4x16x32xf32>, vector<4x32x32xf32>, vector<4x16x32xf32> -> vector<4x16x32xf32>
    "tpu.trace_stop"() : () -> ()
    %c0_29 = arith.constant 0 : index
    %c0_30 = arith.constant 0 : index
    %c0_31 = arith.constant 0 : index
    %36 = vector.load %arg20[%c0_29, %c0_30, %c0_31] : memref<4x16x32xf32, #tpu.memory_space<vmem>>, vector<4x16x32xf32>
    %37 = vector.broadcast %25 : vector<4x16x1xf32> to vector<4x16x32xf32>
    %38 = arith.mulf %37, %36 : vector<4x16x32xf32>
    %39 = arith.addf %38, %35 : vector<4x16x32xf32>
    %c0_32 = arith.constant 0 : index
    %c0_33 = arith.constant 0 : index
    %c0_34 = arith.constant 0 : index
    %40 = vector.load %arg20[%c0_32, %c0_33, %c0_34] : memref<4x16x32xf32, #tpu.memory_space<vmem>>, vector<4x16x32xf32>
    tpu.vector_store %arg20[%c0_32, %c0_33, %c0_34], %39 {strides = array<i32>} : memref<4x16x32xf32, #tpu.memory_space<vmem>>, vector<4x16x32xf32>,
    %c0_35 = arith.constant 0 : index
    %c0_36 = arith.constant 0 : index
    %c0_37 = arith.constant 0 : index
    %41 = vector.load %arg18[%c0_35, %c0_36, %c0_37] : memref<4x16x1xf32, #tpu.memory_space<vmem>>, vector<4x16x1xf32>
    tpu.vector_store %arg18[%c0_35, %c0_36, %c0_37], %23 {strides = array<i32>} : memref<4x16x1xf32, #tpu.memory_space<vmem>>, vector<4x16x1xf32>,
    %c1_i32 = arith.constant 1 : i32
    %42 = arith.cmpi eq, %arg1, %c1_i32 : i32
    %43 = arith.extui %42 : i1 to i32
    %c0_i32_38 = arith.constant 0 : i32
    %44 = arith.cmpi ne, %43, %c0_i32_38 : i32
    scf.if %44 {
      %c0_39 = arith.constant 0 : index
      %c0_40 = arith.constant 0 : index
      %c0_41 = arith.constant 0 : index
      %45 = vector.load %arg19[%c0_39, %c0_40, %c0_41] : memref<4x16x1xf32, #tpu.memory_space<vmem>>, vector<4x16x1xf32>
      %46 = tpu.reciprocal %45 : vector<4x16x1xf32> -> vector<4x16x1xf32>
      %c0_42 = arith.constant 0 : index
      %c0_43 = arith.constant 0 : index
      %c0_44 = arith.constant 0 : index
      %47 = vector.load %arg20[%c0_42, %c0_43, %c0_44] : memref<4x16x32xf32, #tpu.memory_space<vmem>>, vector<4x16x32xf32>
      %48 = vector.broadcast %46 : vector<4x16x1xf32> to vector<4x16x32xf32>
      %49 = arith.mulf %47, %48 : vector<4x16x32xf32>
      %c0_45 = arith.constant 0 : index
      %c0_46 = arith.constant 0 : index
      %c0_47 = arith.constant 0 : index
      %50 = vector.load %arg12[%c0_45, %c0_46, %c0_47] : memref<4x32x128xf32, #tpu.memory_space<vmem>>, vector<4x32x128xf32>
      "tpu.trace_start"() <{level = 10 : i32, message = "hld,hdf->hlf"}> : () -> ()
      %cst_48 = arith.constant dense<0.000000e+00> : vector<4x16x128xf32>
      %51 = tpu.matmul %49, %50, %cst_48 {dimension_numbers = #tpu.dot_dimension_numbers<[2], [1], [1], [2], [0, 0, 0, 1, 1, 2], [0], [0]>} : vector<4x16x32xf32>, vector<4x32x128xf32>, vector<4x16x128xf32> -> vector<4x16x128xf32>
      "tpu.trace_stop"() : () -> ()
      %cst_49 = arith.constant dense<0.000000e+00> : vector<16x128xf32>
      %52 = vector.multi_reduction <add>, %51, %cst_49 [0] : vector<4x16x128xf32> to vector<16x128xf32>
      %c0_50 = arith.constant 0 : index
      %c0_51 = arith.constant 0 : index
      %53 = vector.load %arg13[%c0_50, %c0_51] : memref<1x128xf32, #tpu.memory_space<vmem>>, vector<1x128xf32>
      %54 = vector.broadcast %53 : vector<1x128xf32> to vector<16x128xf32>
      %55 = arith.addf %52, %54 : vector<16x128xf32>
      %c0_52 = arith.constant 0 : index
      %c0_53 = arith.constant 0 : index
      %56 = vector.load %arg2[%c0_52, %c0_53] : memref<16x128xf32, #tpu.memory_space<vmem>>, vector<16x128xf32>
      %57 = arith.addf %56, %55 : vector<16x128xf32>
      %cst_54 = arith.constant dense<0.000000e+00> : vector<16xf32>
      %58 = vector.multi_reduction <add>, %57, %cst_54 [1] : vector<16x128xf32> to vector<16xf32>
      %59 = vector.shape_cast %58 : vector<16xf32> to vector<16x1xf32>
      %cst_55 = arith.constant 1.280000e+02 : f32
      %60 = vector.broadcast %cst_55 : f32 to vector<16x1xf32>
      %61 = arith.divf %59, %60 : vector<16x1xf32>
      %62 = vector.broadcast %61 : vector<16x1xf32> to vector<16x128xf32>
      %63 = arith.subf %57, %62 : vector<16x128xf32>
      %64 = arith.mulf %63, %63 : vector<16x128xf32>
      %cst_56 = arith.constant dense<0.000000e+00> : vector<16xf32>
      %65 = vector.multi_reduction <add>, %64, %cst_56 [1] : vector<16x128xf32> to vector<16xf32>
      %66 = vector.shape_cast %65 : vector<16xf32> to vector<16x1xf32>
      %cst_57 = arith.constant 1.280000e+02 : f32
      %67 = vector.broadcast %cst_57 : f32 to vector<16x1xf32>
      %68 = arith.divf %66, %67 : vector<16x1xf32>
      %69 = vector.broadcast %61 : vector<16x1xf32> to vector<16x128xf32>
      %70 = arith.subf %57, %69 : vector<16x128xf32>
      %cst_58 = arith.constant 9.99999974E-6 : f32
      %71 = vector.broadcast %cst_58 : f32 to vector<16x1xf32>
      %72 = arith.addf %68, %71 : vector<16x1xf32>
      %73 = math.rsqrt %72 : vector<16x1xf32>
      %74 = vector.broadcast %73 : vector<16x1xf32> to vector<16x128xf32>
      %75 = arith.mulf %70, %74 : vector<16x128xf32>
      %c0_59 = arith.constant 0 : index
      %c0_60 = arith.constant 0 : index
      %76 = vector.load %arg14[%c0_59, %c0_60] : memref<1x128xf32, #tpu.memory_space<vmem>>, vector<1x128xf32>
      %77 = vector.broadcast %76 : vector<1x128xf32> to vector<16x128xf32>
      %78 = arith.mulf %75, %77 : vector<16x128xf32>
      %c0_61 = arith.constant 0 : index
      %c0_62 = arith.constant 0 : index
      %79 = vector.load %arg15[%c0_61, %c0_62] : memref<1x128xf32, #tpu.memory_space<vmem>>, vector<1x128xf32>
      %80 = vector.broadcast %79 : vector<1x128xf32> to vector<16x128xf32>
      %81 = arith.addf %78, %80 : vector<16x128xf32>
      %c0_63 = arith.constant 0 : index
      %c0_64 = arith.constant 0 : index
      %82 = vector.load %arg16[%c0_63, %c0_64] : memref<16x128xf32, #tpu.memory_space<vmem>>, vector<16x128xf32>
      tpu.vector_store %arg16[%c0_63, %c0_64], %81 {strides = array<i32>} : memref<16x128xf32, #tpu.memory_space<vmem>>, vector<16x128xf32>,
    } else {
    }
    return
  }
  func.func @transform_0(%arg0: i32, %arg1: i32) -> (i32, i32) {
    %c0_i32 = arith.constant 0 : i32
    %c0_i32_0 = arith.constant 0 : i32
    return %c0_i32, %arg0 : i32, i32
  }
  func.func @transform_1(%arg0: i32, %arg1: i32) -> (i32, i32) {
    %c0_i32 = arith.constant 0 : i32
    %c0_i32_0 = arith.constant 0 : i32
    return %c0_i32, %arg0 : i32, i32
  }
  func.func @transform_2(%arg0: i32, %arg1: i32) -> (i32, i32) {
    %c0_i32 = arith.constant 0 : i32
    return %arg1, %arg0 : i32, i32
  }
  func.func @transform_3(%arg0: i32, %arg1: i32) -> (i32, i32) {
    %c0_i32 = arith.constant 0 : i32
    return %arg1, %arg0 : i32, i32
  }
  func.func @transform_4(%arg0: i32, %arg1: i32) -> (i32, i32) {
    %c0_i32 = arith.constant 0 : i32
    %c0_i32_0 = arith.constant 0 : i32
    %c0_i32_1 = arith.constant 0 : i32
    return %c0_i32, %c0_i32_0 : i32, i32
  }
  func.func @transform_5(%arg0: i32, %arg1: i32) -> (i32, i32) {
    %c0_i32 = arith.constant 0 : i32
    %c0_i32_0 = arith.constant 0 : i32
    %c0_i32_1 = arith.constant 0 : i32
    return %c0_i32, %c0_i32_0 : i32, i32
  }
  func.func @transform_6(%arg0: i32, %arg1: i32) -> (i32, i32) {
    %c0_i32 = arith.constant 0 : i32
    %c0_i32_0 = arith.constant 0 : i32
    %c0_i32_1 = arith.constant 0 : i32
    return %c0_i32, %c0_i32_0 : i32, i32
  }
  func.func @transform_7(%arg0: i32, %arg1: i32) -> (i32, i32) {
    %c0_i32 = arith.constant 0 : i32
    %c0_i32_0 = arith.constant 0 : i32
    %c0_i32_1 = arith.constant 0 : i32
    return %c0_i32, %c0_i32_0 : i32, i32
  }
  func.func @transform_8(%arg0: i32, %arg1: i32) -> (i32, i32) {
    %c0_i32 = arith.constant 0 : i32
    %c0_i32_0 = arith.constant 0 : i32
    %c0_i32_1 = arith.constant 0 : i32
    return %c0_i32, %c0_i32_0 : i32, i32
  }
  func.func @transform_9(%arg0: i32, %arg1: i32) -> (i32, i32) {
    %c0_i32 = arith.constant 0 : i32
    %c0_i32_0 = arith.constant 0 : i32
    %c0_i32_1 = arith.constant 0 : i32
    return %c0_i32, %c0_i32_0 : i32, i32
  }
  func.func @transform_10(%arg0: i32, %arg1: i32) -> (i32, i32, i32) {
    %c0_i32 = arith.constant 0 : i32
    %c0_i32_0 = arith.constant 0 : i32
    %c0_i32_1 = arith.constant 0 : i32
    %c0_i32_2 = arith.constant 0 : i32
    return %c0_i32, %c0_i32_0, %c0_i32_1 : i32, i32, i32
  }
  func.func @transform_11(%arg0: i32, %arg1: i32) -> (i32, i32) {
    %c0_i32 = arith.constant 0 : i32
    %c0_i32_0 = arith.constant 0 : i32
    %c0_i32_1 = arith.constant 0 : i32
    return %c0_i32, %c0_i32_0 : i32, i32
  }
  func.func @transform_12(%arg0: i32, %arg1: i32) -> (i32, i32) {
    %c0_i32 = arith.constant 0 : i32
    %c0_i32_0 = arith.constant 0 : i32
    %c0_i32_1 = arith.constant 0 : i32
    return %c0_i32, %c0_i32_0 : i32, i32
  }
  func.func @transform_13(%arg0: i32, %arg1: i32) -> (i32, i32) {
    %c0_i32 = arith.constant 0 : i32
    %c0_i32_0 = arith.constant 0 : i32
    %c0_i32_1 = arith.constant 0 : i32
    return %c0_i32, %c0_i32_0 : i32, i32
  }
  func.func @transform_14(%arg0: i32, %arg1: i32) -> (i32, i32) {
    %c0_i32 = arith.constant 0 : i32
    %c0_i32_0 = arith.constant 0 : i32
    return %c0_i32, %arg0 : i32, i32
  }
}

</mosaic_0001>

<bundles_post_ra>
// kernel: tpu_custom_call.1
= control target key start
LH: loop header
LB: loop body
LE: loop exit
PB: predicated region body
PF: predicated region fallthrough
CT: control target
= control target key end

     0   :  { %s5338_s0 = inlined_call_operand.hbm [shape: f32[16,256], index: 0, kind: input, shape index: {}]   ;;  %s5339_s1 = inlined_call_operand.hbm [shape: f32[16,256], index: 1, kind: input, shape index: {}]   ;;  %s5340_s2 = inlined_call_operand.vmem [shape: f32[64,256], index: 2, kind: input, shape index: {}]   ;;  %s5341_s3 = inlined_call_operand.vmem [shape: f32[64,256], index: 3, kind: input, shape index: {}]   ;;  %s5342_s4 = inlined_call_operand.vmem [shape: f32[128,128], index: 4, kind: input, shape index: {}]   ;;  %s5343_s5 = inlined_call_operand.hbm [shape: f32[128,128], index: 5, kind: input, shape index: {}]   ;;  %s5344_s6 = inlined_call_operand.hbm [shape: f32[128,128], index: 6, kind: input, shape index: {}]   ;;  %s5345_s7 = inlined_call_operand.vmem [shape: f32[128,1], index: 7, kind: input, shape index: {}]   ;;  %s5346_s8 = inlined_call_operand.vmem [shape: f32[128,1], index: 8, kind: input, shape index: {}]   ;;  %s5347_s9 = inlined_call_operand.vmem [shape: f32[128,1], index: 9, kind: input, shape index: {}]   ;;  %s5348_s10 = inlined_call_operand.hbm [shape: f32[4,32,128], index: 10, kind: input, shape index: {}]   ;;  %s5349_s11 = inlined_call_operand.vmem [shape: f32[1,128], index: 11, kind: input, shape index: {}]   ;;  %s5350_s12 = inlined_call_operand.vmem [shape: f32[1,128], index: 12, kind: input, shape index: {}]   ;;  %s5351_s13 = inlined_call_operand.vmem [shape: f32[1,128], index: 13, kind: input, shape index: {}]   ;;  %s5352_s14 = inlined_call_operand.hbm [shape: f32[16,256], index: 14, kind: output, shape index: {}]  }
   0x1   :  { %5376 = sst [smem:[#allocation37_spill]] %s5341_s3 }
   0x2   :  { %5377 = sst [smem:[#allocation38_spill]] %s5342_s4 }
   0x3   :  { %5378 = sst [smem:[#allocation39_spill]] %s5345_s7 }
   0x4   :  { %5379 = sst [smem:[#allocation40_spill]] %s5346_s8 }
   0x5   :  { %5380 = sst [smem:[#allocation41_spill]] %s5347_s9 }
   0x6   :  { %5381 = sst [smem:[#allocation42_spill]] %s5349_s11 }
   0x7   :  { %5382 = sst [smem:[#allocation43_spill]] %s5350_s12 }
   0x8   :  { %5383 = sst [smem:[#allocation44_spill]] %s5351_s13 }
   0x9   :  { %5384 = sst [smem:[#allocation45_spill]] %s5352_s14 }
   0xa   :  { %19 = vsyncpa [#allocation7], 0 }
   0xb   :  { %21 = vsyncpa [#allocation7 + $0x1], 0 }
   0xc   :  { %22 = vsyncpa [#allocation10], 0 }
   0xd   :  { %24 = vsyncpa [#allocation10 + $0x1], 0 }
   0xe   :  { %25 = vsyncpa [#allocation15], 0 }
   0xf   :  { %26 = vsyncpa [#allocation8], 0 }
  0x10   :  { %28 = vsyncpa [#allocation8 + $0x1], 0  ;;  %s4442_s29 = smov 0   ;;  %s4444_s30 = smov 0  }
  0x11   :  { %s4446_s15 = smov 0   ;;  %s4448_s16 = smov 0  }
  0x12   :  { %s4450_s17 = smov 0   ;;  %s4452_s18 = smov 0  }
  0x13   :  { %s4454_s19 = smov 0   ;;  %s4456_s20 = smov 0  }
  0x14   :  { %s4458_s21 = smov 0   ;;  %s4460_s22 = smov 0  }
  0x15 LB: > { %5385 = sst [smem:[#allocation23_spill]] %s4310_s29  ;;  %s4493_s23 = sadd.s32 4294967295, %s4346_s22   ;;  %s4346_s22 = sphi %s4460_s22, %s34_s22   ;;  %s4342_s21 = sphi %s4458_s21, %s5454_s21   ;;  %s4338_s20 = sphi %s4456_s20, %s5453_s20   ;;  %s4334_s19 = sphi %s4454_s19, %s5452_s19   ;;  %s4330_s18 = sphi %s4452_s18, %s5451_s18   ;;  %s4326_s17 = sphi %s4450_s17, %s5450_s17   ;;  %s4322_s16 = sphi %s4448_s16, %s5449_s16   ;;  %s4318_s15 = sphi %s4446_s15, %s5443_s15   ;;  %s4314_s30 = sphi %s4444_s30, %s5448_s30   ;;  %s4310_s29 = sphi %s4442_s29, %s5447_s29  }
  0x16   : > { %5386 = sst [smem:[#allocation24_spill]] %s4318_s15  ;;  %s3315_s24 = sadd.s32 4294967294, %s4346_s22  }
  0x17   : > { %5387 = sst [smem:[#allocation25_spill]] %s4322_s16  ;;  %s43_s25 = sadd.s32 1, %s4338_s20 }
  0x18   : > { %5388 = sst [smem:[#allocation26_spill]] %s4330_s18  ;;  %s46_s26 = sadd.s32 1, %s4342_s21 }
  0x19   : > { %5389 = sst [smem:[#allocation27_spill]] %s4334_s19  ;;  %p44_p0 = scmp.ge.s32.totalorder %s43_s25, 2 }
  0x1a   : > { %5390 = sst [smem:[#allocation28_spill]] %s4493_s23  ;;  %s53_s27 = sadd.s32 1, %s4326_s17 }
  0x1b   : > { %p60_p1 = scmp.ne.s32.totalorder %s4326_s17, %s4322_s16  ;;  %p61_p2 = scmp.eq.s32.totalorder %s4346_s22, 0 }
  0x1c   : > { %s5456_s25 = smov (%p44_p0, %s43_s25), 0  ;;  %s5458_s26 = smov (!%p44_p0, %s46_s26), %s4342_s21 }
  0x1d   : > { %5391 = sst [smem:[#allocation29_spill]] %s5456_s25  ;;  %p4510_p3 = por %p61_p2, %p60_p1 }
  0x1e   : > { %p66_p4 = scmp.ne.s32.totalorder %s4322_s16, %s4318_s15  ;;  %p48_p5 = scmp.ge.s32.totalorder %s5458_s26, 2 }
  0x1f   : > { %s5392_s28 = scalar_select %p4510_p3, 1, 0 }
  0x20   : > { %p5358_p6 = scmp.eq.s32.totalorder %s4493_s23, 0  ;;  %s102_s14 = ssub.s32 %s4338_s20, %s5456_s25 }
  0x21   : > { %s107_s19 = sadd.s32 1, %s4314_s30  ;;  %s5460_s26 = smov (%p48_p5, %s5458_s26), 0 }
  0x22   : > { %5393 = sst [smem:[#allocation30_spill]] %s5460_s26  ;;  %p4527_p7 = por %p5358_p6, %p66_p4 }
  0x23   : > { %p114_p8 = scmp.ne.s32.totalorder %s4314_s30, %s4310_s29  ;;  %s50_s12 = ssub.s32 %s4342_s21, %s5460_s26 }
  0x24   : > { %s5394_s13 = scalar_select %p4527_p7, 1, 0 }
  0x25   : > { %p382_p9 = scmp.eq.s32.totalorder %s4493_s23, 3  ;;  %p51_p10 = scmp.eq.s32.totalorder %s50_s12, 0 }
  0x26   : > { %5395 = sst [smem:[#allocation31_spill]] %s5394_s13  ;;  %s104_s11 = sor.u32 %s102_s14, %s50_s12 }
  0x27   : > { %p105_p11 = scmp.eq.s32.totalorder %s104_s11, 0  ;;  %p4538_p12 = por %p114_p8, %p61_p2 }
  0x28   : > { %s4543_s9 = scalar_select %p51_p10, %s4326_s17, %s53_s27  }
  0x29   : > { %s5396_s25 = scalar_select %p4538_p12, 1, 0 }
  0x2a   : > { %5397 = sst [smem:[#allocation32_spill]] %s4543_s9  ;;  %p4551_p13 = por %p382_p9, %p60_p1 }
  0x2b   : > { %s4546_s8 = scalar_select %p105_p11, %s4314_s30, %s107_s19  }
  0x2c   : > { %s5399_s7 = scalar_select %p4551_p13, 1, 0 }
  0x2d   : > { %5398 = sst [smem:[#allocation33_spill]] %s4546_s8  ;;  %p388_p0 = scmp.eq.s32.totalorder %s3315_s24, 3 }
  0x2e   : > { %5400 = sst [smem:[#allocation34_spill]] %s5399_s7  ;;  %p3316_p5 = scmp.ge.s32.totalorder %s4346_s22, 1 }
  0x2f   : > { %p395_p6 = scmp.lt.s32.totalorder %s4346_s22, 5  ;;  %p4560_p7 = por %p388_p0, %p66_p4 }
  0x30   : > { %s4348_s14 = smov [#allocation14]   ;;  %p5405_p1 = scmp.eq.s32.totalorder %s4493_s23, 0 }
  0x31   : > { %s5401_s11 = scalar_select %p4560_p7, 1, 0 }
  0x32   : > { %p4564_p2 = pnand %p3316_p5, %p395_p6  ;;  %s423_s19 = sshll.u32 %s4348_s14, 4  ;;  %s424_s19 = int_to_ptr.vmem [resolvable:$true] %s423_s19 }
  0x33   : > { %5402 = sst [smem:[#allocation35_spill]] %s5401_s11  ;;  %s4080_s9 = scalar_lea.hbm %s5344_s6, 2048 }
  0x34   : > { %s5403_s12 = scalar_select %p4564_p2, 1, 0 }
  0x35   : > { %p3905_p8 = pneg %p4564_p2  ;;  %p4081_p4 = scmp.ne.s32.totalorder %s5344_s6, %s4080_s9 }
  0x36   : > { %5404 = sst [smem:[#allocation36_spill]] %s5403_s12  ;;  %p4087_p0 = scmp.lt.u32.totalorder %s4080_s9, %s5344_s6 }
  0x37   : > { %p4572_p9 = pnand %p3905_p8, %p5405_p1 }
  0x39   : > { %p4584_p6 = pneg %p4572_p9 }
  0x3b   : > { %p4083_p10 = pnand %p4584_p6, %p4081_p4 }
  0x3d   : > { %p4084_p11 = pneg %p4083_p10 }
  0x3f   : > { %p4089_p5 = pnand %p4087_p0, %p4084_p11 }
  0x41   : > { %4092 = shalt.err (!%p4089_p5)
}
  0x42   : > { %s4093_s26 = scalar_lea.vmem %s424_s19, 2048  ;;  %p4101_p13 = scmp.lt.s32.totalorder %s424_s19, %s424_s19 }
  0x43   : > { %p4094_p8 = scmp.ne.s32.totalorder %s424_s19, %s4093_s26  ;;  %p4102_p2 = scmp.lt.s32.totalorder %s4093_s26, %s4093_s26 }
  0x45   : > { %p4096_p1 = pnand %p4094_p8, %p4584_p6  ;;  %p4103_p12 = por %p4102_p2, %p4101_p13 }
  0x47   : > { %p4097_p7 = pneg %p4096_p1 }
  0x49   : > { %p4104_p3 = pnand %p4103_p12, %p4097_p7 }
  0x4b   : > { %4107 = shalt.err (!%p4104_p3)
}
  0x4c   : > { %s4349_s8 = smov 128   ;;  %s4350_s11 = smov 8  }
  0x4d   : > { %3911 = dma.hbm_to_vmem [thread:$0]  (!%p4572_p9), %s5344_s6, 2048, %s424_s19, [#allocation15], %s4349_s8, %s4349_s8, %s4350_s11  }
  0x4e   : > { %s4351_s27 = smov [#allocation13]   ;;  %s4352_s4 = smov [#allocation16]  }
  0x4f   : > { %s410_s14 = sshll.u32 %s4351_s27, 4  ;;  %s445_s26 = sshll.u32 %s4352_s4, 4  ;;  %s411_s14 = int_to_ptr.vmem [resolvable:$true] %s410_s14  ;;  %s446_s26 = int_to_ptr.vmem [resolvable:$true] %s445_s26 }
  0x50   : > { %s4108_s23 = scalar_lea.hbm %s5343_s5, 2048 }
  0x51   : > { %p4109_p3 = scmp.ne.s32.totalorder %s5343_s5, %s4108_s23  ;;  %p4115_p13 = scmp.lt.u32.totalorder %s4108_s23, %s5343_s5 }
  0x53   : > { %p4111_p7 = pnand %p4109_p3, %p4584_p6 }
  0x55   : > { %p4112_p12 = pneg %p4111_p7 }
  0x57   : > { %p4117_p2 = pnand %p4115_p13, %p4112_p12 }
  0x59   : > { %4120 = shalt.err (!%p4117_p2)
}
  0x5a   : > { %s4121_s19 = scalar_lea.vmem %s411_s14, 2048  ;;  %p4129_p0 = scmp.lt.s32.totalorder %s411_s14, %s411_s14 }
  0x5b   : > { %p4122_p4 = scmp.ne.s32.totalorder %s411_s14, %s4121_s19  ;;  %p4130_p5 = scmp.lt.s32.totalorder %s4121_s19, %s4121_s19 }
  0x5d   : > { %p4124_p10 = pnand %p4122_p4, %p4584_p6  ;;  %p4131_p8 = por %p4130_p5, %p4129_p0 }
  0x5f   : > { %p4125_p11 = pneg %p4124_p10 }
  0x61   : > { %p4132_p1 = pnand %p4131_p8, %p4125_p11 }
  0x63   : > { %4135 = shalt.err (!%p4132_p1)
}
  0x64   : > { %3908 = dma.hbm_to_vmem [thread:$0]  (!%p4572_p9), %s5343_s5, 2048, %s411_s14, [#allocation10], %s4349_s8, %s4349_s8, %s4350_s11  }
  0x65   : > { %s4136_s16 = scalar_lea.hbm %s5348_s10, 2048 }
  0x66   : > { %p4137_p3 = scmp.ne.s32.totalorder %s5348_s10, %s4136_s16  ;;  %p4143_p13 = scmp.lt.u32.totalorder %s4136_s16, %s5348_s10 }
  0x68   : > { %p4139_p7 = pnand %p4137_p3, %p4584_p6 }
  0x6a   : > { %p4140_p12 = pneg %p4139_p7 }
  0x6c   : > { %p4145_p2 = pnand %p4143_p13, %p4140_p12 }
  0x6e   : > { %4148 = shalt.err (!%p4145_p2)
}
  0x6f   : > { %s4149_s9 = scalar_lea.vmem %s446_s26, 2048  ;;  %p4157_p0 = scmp.lt.s32.totalorder %s446_s26, %s446_s26 }
  0x70   : > { %p4150_p4 = scmp.ne.s32.totalorder %s446_s26, %s4149_s9  ;;  %p4158_p5 = scmp.lt.s32.totalorder %s4149_s9, %s4149_s9 }
  0x72   : > { %p4152_p10 = pnand %p4150_p4, %p4584_p6  ;;  %p4159_p8 = por %p4158_p5, %p4157_p0 }
  0x74   : > { %p4153_p11 = pneg %p4152_p10 }
  0x76   : > { %p4160_p1 = pnand %p4159_p8, %p4153_p11 }
  0x78   : > { %4163 = shalt.err (!%p4160_p1)
}
  0x79   : > { %3914 = dma.hbm_to_vmem [thread:$0]  (!%p4572_p9), %s5348_s10, 2048, %s446_s26, [#allocation15], %s4349_s8, %s4349_s8, %s4350_s11  }
  0x7a   : > { %p3320_p3 = scmp.ge.s32.totalorder %s4346_s22, 4 }
  0x7b   : > { %s468_s15 = sand.u32 (!%p3320_p3), 1, %s4326_s17   ;;  %s3322_s19 = sshll.u32 (!%p3320_p3), %s4342_s21, 7 }
  0x7c   : > { %464 = sbr.rel (%p3320_p3) target bundleno = 197 (0xc5), region = 56  ;;  %s4648_s3 = sshll.u32 (!%p3320_p3), %s468_s15, 4 }
  0x7d   : > { %s4655_s13 = scalar_lea.hbm (!%p3320_p3), %s5338_s0, %s3322_s19  ;;  %s472_s8 = scalar_lea.vmem (!%p3320_p3), [#allocation6], %s4648_s3 }
  0x7e   : > { %s478_s11 = sshll.u32 (!%p3320_p3), %s472_s8, 4  ;;  %s488_s26 = sand.u32 (!%p3320_p3), 1, %s4346_s22   ;;  %s4658_s11 = int_to_ptr.vmem [resolvable:$true] %s478_s11 }
  0x7f   : > { %s4661_s29 = scalar_lea.sflag (!%p3320_p3), [#allocation7], %s468_s15  ;;  %s4164_s16 = scalar_lea.hbm (!%p3320_p3), %s4655_s13, 256 }
  0x80   : > { %p4165_p9 = scmp.ne.s32.totalorder (!%p3320_p3), %s4655_s13, %s4164_s16  ;;  %p5408_p6 = scmp.ne.s32.totalorder (!%p3320_p3), %s5392_s28, 0 }
  0x81   : > { %s4168_s12 = scalar_lea.hbm (!%p3320_p3), %s5338_s0, 512  ;;  %p4169_p13 = scmp.lt.u32.totalorder (!%p3320_p3), %s4655_s13, %s5338_s0 }
  0x82   : > { %p4166_p7 = pnand (!%p3320_p3), %p4165_p9, %p5408_p6  ;;  %p4170_p2 = scmp.lt.u32.totalorder (!%p3320_p3), %s4168_s12, %s4164_s16 }
  0x83   : > { %p4172_p10 = scmp.lt.u32.totalorder %s4164_s16, %s4655_s13 }
  0x84   : > { %p4167_p12 = pneg %p4166_p7  ;;  %p4171_p4 = por %p4170_p2, %p4169_p13 }
  0x86   : > { %p4173_p11 = por %p4172_p10, %p4171_p4 }
  0x88   : > { %p4174_p0 = pnand %p4173_p11, %p4167_p12 }
  0x8a   : > { %4177 = shalt.err (!%p4174_p0)
}
  0x8b   : > { %s4178_s27 = scalar_lea.vmem %s4658_s11, 256  ;;  %s4353_s14 = smov [#allocation6]  }
  0x8c   : > { %p4179_p5 = scmp.ne.s32.totalorder %s4658_s11, %s4178_s27  ;;  %s4182_s15 = sshll.u32 %s4353_s14, 4  ;;  %s4183_s15 = int_to_ptr.vmem [resolvable:$false] %s4182_s15 }
  0x8d   : > { %s4184_s24 = scalar_lea.vmem %s4183_s15, 512  ;;  %p4185_p3 = scmp.lt.s32.totalorder %s4658_s11, %s4183_s15 }
  0x8e   : > { %p4180_p8 = pnand %p4179_p5, %p5408_p6  ;;  %p4186_p9 = scmp.lt.s32.totalorder %s4184_s24, %s4178_s27 }
  0x90   : > { %p4181_p1 = pneg %p4180_p8  ;;  %p4187_p7 = por %p4186_p9, %p4185_p3 }
  0x92   : > { %p4188_p13 = pnand %p4187_p7, %p4181_p1 }
  0x94   : > { %4191 = shalt.err (!%p4188_p13)
}
  0x95   : > { %s4354_s4 = smov 256   ;;  %s4355_s8 = smov 128  }
  0x96   : > { %s4356_s16 = smov 8   ;;  %s4693_s12 = scalar_lea.hbm %s5339_s1, %s3322_s19 }
  0x97   : > { %3893 = dma.hbm_to_vmem [thread:$0]  (%p5408_p6), %s4655_s13, 256, %s4658_s11, %s4661_s29, %s4354_s4, %s4355_s8, %s4356_s16  }
  0x98   : > { %s492_s7 = scalar_lea.vmem [#allocation9], %s4648_s3  ;;  %s4700_s27 = scalar_lea.sflag [#allocation10], %s488_s26 }
  0x99   : > { %s498_s9 = sshll.u32 %s492_s7, 4  ;;  %s4192_s14 = scalar_lea.hbm %s4693_s12, 256  ;;  %s4696_s9 = int_to_ptr.vmem [resolvable:$true] %s498_s9 }
  0x9a   : > { %p4193_p12 = scmp.ne.s32.totalorder %s4693_s12, %s4192_s14  ;;  %s4196_s19 = scalar_lea.hbm %s5339_s1, 512 }
  0x9b   : > { %p4197_p10 = scmp.lt.u32.totalorder %s4693_s12, %s5339_s1  ;;  %p4198_p11 = scmp.lt.u32.totalorder %s4196_s19, %s4192_s14 }
  0x9c   : > { %p4194_p2 = pnand %p4193_p12, %p5408_p6  ;;  %p4200_p5 = scmp.lt.u32.totalorder %s4192_s14, %s4693_s12 }
  0x9d   : > { %p4199_p0 = por %p4198_p11, %p4197_p10 }
  0x9e   : > { %p4195_p4 = pneg %p4194_p2 }
  0x9f   : > { %p4201_p8 = por %p4200_p5, %p4199_p0 }
  0xa1   : > { %p4202_p1 = pnand %p4201_p8, %p4195_p4 }
  0xa3   : > { %4205 = shalt.err (!%p4202_p1)
}
  0xa4   : > { %s4206_s3 = scalar_lea.vmem %s4696_s9, 256  ;;  %s4357_s26 = smov [#allocation9]  }
  0xa5   : > { %p4207_p3 = scmp.ne.s32.totalorder %s4696_s9, %s4206_s3  ;;  %s4210_s24 = sshll.u32 %s4357_s26, 4  ;;  %s4211_s24 = int_to_ptr.vmem [resolvable:$false] %s4210_s24 }
  0xa6   : > { %s4212_s18 = scalar_lea.vmem %s4211_s24, 512  ;;  %p4213_p13 = scmp.lt.s32.totalorder %s4696_s9, %s4211_s24 }
  0xa7   : > { %p4208_p9 = pnand %p4207_p3, %p5408_p6  ;;  %p4214_p12 = scmp.lt.s32.totalorder %s4212_s18, %s4206_s3 }
  0xa9   : > { %p4209_p7 = pneg %p4208_p9  ;;  %p4215_p2 = por %p4214_p12, %p4213_p13 }
  0xab   : > { %p4216_p10 = pnand %p4215_p2, %p4209_p7 }
  0xad   : > { %4219 = shalt.err (!%p4216_p10)
}
  0xae   : > { %3894 = dma.hbm_to_vmem [thread:$0]  (%p5408_p6), %s4693_s12, 256, %s4696_s9, %s4700_s27, %s4354_s4, %s4355_s8, %s4356_s16  }
  0xaf   : > { %p5409_p4 = scmp.ne.s32.totalorder %s5396_s25, 0 }
  0xb0   : > { %s509_s23 = sand.u32 (%p5409_p4), 1, %s4314_s30   ;;  %s3391_s7 = sshll.u32 (%p5409_p4), %s4338_s20, 3 }
  0xb1   : > { %507 = sbr.rel (!%p5409_p4) target bundleno = 184 (0xb8), region = 68  ;;  %s3325_s14 = sshll.u32 (%p5409_p4), %s509_s23, 5 }
  0xb2   : > { %s514_s13 = sadd.s32 (%p5409_p4), %s4342_s21, %s3391_s7  ;;  %s511_s15 = scalar_lea.vmem (%p5409_p4), [#allocation11], %s3325_s14 }
  0xb3   : > { %s3328_s11 = sshll.u32 (%p5409_p4), %s514_s13, 3 }
  0xb4   : > { %s516_s29 = scalar_lea.vmem (%p5409_p4), %s5340_s2, %s3328_s11 }
  0xb5   : > { %v550_v0 = vld [vmem:[%s516_s29] sm:$0xff] (%p5409_p4)  ;;  %v552_v1 = vld [vmem:[%s516_s29 + $0x10] sm:$0xff] (%p5409_p4) }
  0xb6   : > { %v554_v2 = vld [vmem:[%s516_s29 + $0x20] sm:$0xff] (%p5409_p4)  ;;  %551 = vst [vmem:[%s511_s15] sm:$0xff] (%p5409_p4), %v550_v0  ;;  %553 = vst [vmem:[%s511_s15 + $0x8] sm:$0xff] (%p5409_p4), %v552_v1  ;;  %v556_v3 = vld [vmem:[%s516_s29 + $0x30] sm:$0xff] (%p5409_p4) }
  0xb7   : > { %555 = vst [vmem:[%s511_s15 + $0x10] sm:$0xff] (%p5409_p4), %v554_v2  ;;  %557 = vst [vmem:[%s511_s15 + $0x18] sm:$0xff] (%p5409_p4), %v556_v3 }
  0xb8 PF: > { %p5410_p6 = scmp.ne.s32.totalorder %s5396_s25, 0 }
  0xb9   : > { %s565_s4 = sand.u32 (%p5410_p6), 1, %s4314_s30   ;;  %s3392_s8 = sshll.u32 (%p5410_p6), %s4338_s20, 3 }
  0xba   : > { %563 = sbr.rel (!%p5410_p6) target bundleno = 197 (0xc5), region = 106  ;;  %s3329_s16 = sshll.u32 (%p5410_p6), %s565_s4, 5 }
  0xbb   : > { %s570_s12 = sadd.s32 (%p5410_p6), %s4342_s21, %s3392_s8  ;;  %s5411_s26 = sld [smem:[#allocation37_spill]] (%p5410_p6) }
  0xbc   : > { %s3332_s9 = sshll.u32 (%p5410_p6), %s570_s12, 3  ;;  %s567_s18 = scalar_lea.vmem (%p5410_p6), [#allocation12], %s3329_s16 }
  0xc1   : > { %s572_s24 = scalar_lea.vmem %s5411_s26, %s3332_s9 }
  0xc2   : > { %v606_v4 = vld [vmem:[%s572_s24] sm:$0xff]  ;;  %v608_v5 = vld [vmem:[%s572_s24 + $0x10] sm:$0xff] }
  0xc3   : > { %v610_v6 = vld [vmem:[%s572_s24 + $0x20] sm:$0xff]  ;;  %607 = vst [vmem:[%s567_s18] sm:$0xff] %v606_v4  ;;  %609 = vst [vmem:[%s567_s18 + $0x8] sm:$0xff] %v608_v5  ;;  %v612_v7 = vld [vmem:[%s572_s24 + $0x30] sm:$0xff] }
  0xc4   : > { %611 = vst [vmem:[%s567_s18 + $0x10] sm:$0xff] %v610_v6  ;;  %613 = vst [vmem:[%s567_s18 + $0x18] sm:$0xff] %v612_v7 }
  0xc5 PF: > { %s5412_s25 = sld [smem:[#allocation36_spill]] }
  0xcb   : > { %p5413_p11 = scmp.ne.s32.totalorder %s5412_s25, 0 }
  0xcc   : > { %s5414_s23 = sld [smem:[#allocation25_spill]] (!%p5413_p11)  ;;  %s5415_s7 = sld [smem:[#allocation31_spill]] (!%p5413_p11) }
  0xcd   : > { %622 = sbr.rel (%p5413_p11) target bundleno = 2296 (0x8f8), region = 144 }
  0xd2   : > { %s4746_s14 = sand.u32 (!%p5413_p11), 1, %s5414_s23   ;;  %p5416_p0 = scmp.ne.s32.totalorder (!%p5413_p11), %s5415_s7, 0 }
  0xd3   : > { %s3334_s13 = sshll.u32 (!%p5413_p11), %s4746_s14, 4  ;;  %s625_s11 = scalar_lea.sflag (!%p5413_p11), [#allocation7], %s4746_s14 }
  0xd4   : > { %s4750_s19 = scalar_lea.vmem [#allocation6], %s3334_s13 }
  0xd5   : > { %4289 = dma.done.wait (%p5416_p0), %s625_s11, 256  }
  0xd6   : > { %4291 = vsyncadd (%p5416_p0), %s625_s11, 4294967040  ;;  %s5417_s28 = sld [smem:[#allocation28_spill]]  ;;  %s637_s4 = scalar_lea.vmem [#allocation9], %s3334_s13 }
  0xdc   : > { %s633_s29 = sand.u32 1, %s5417_s28  }
  0xdd   : > { %s634_s15 = scalar_lea.sflag [#allocation10], %s633_s29 }
  0xde   : > { %4293 = dma.done.wait (%p5416_p0), %s634_s15, 256  }
  0xdf   : > { %4295 = vsyncadd (%p5416_p0), %s634_s15, 4294967040  ;;  %s5418_s8 = sld [smem:[#allocation23_spill]]  ;;  %p5419_p5 = scmp.eq.s32.totalorder %s5417_s28, 0 }
  0xe5   : > { %s643_s16 = sand.u32 1, %s5418_s8  }
  0xe6   : > { %s3336_s12 = sshll.u32 %s643_s16, 5 }
  0xe7   : > { %s4762_s9 = scalar_lea.vmem [#allocation11], %s3336_s12  ;;  %s4764_s27 = scalar_lea.vmem [#allocation12], %s3336_s12 }
  0xe8   : > { %4297 = dma.done.wait (%p5419_p5), [#allocation10], 2048   ;;  %p5420_p8 = pmov %p5419_p5 }
  0xe9   : > { %p5421_p1 = pmov %p5419_p5 }
  0xea   : > { %4299 = vsyncadd (%p5420_p8), [#allocation10], 4294965248 }
  0xeb   : > { %4301 = dma.done.wait (%p5421_p1), [#allocation15], 4096   ;;  %p5422_p3 = pmov %p5421_p1 }
  0xec   : > { %s4774_s3 = scalar_lea.vmem [#allocation17], %s3334_s13  ;;  %s5423_s26 = sld [smem:[#allocation26_spill]] }
  0xed   : > { %4303 = vsyncadd (%p5422_p3), [#allocation15], 4294963200 }
  0xf2   : > { %p3342_p9 = scmp.ne.s32.totalorder %s5423_s26, 0 }
  0xf3   : > { %v727_v8 = vld [vmem:[%s4750_s19] sm:$0xff] (!%p3342_p9)  ;;  %v728_v9 = vld [vmem:[%s4750_s19 + $0x8] sm:$0xff] (!%p3342_p9)  ;;  %s5424_s25 = sld [smem:[#allocation38_spill]] (!%p3342_p9)  ;;  %v4358_v15 = vmov (!%p3342_p9), 0   ;;  %s5425_s28 = sld [smem:[#allocation39_spill]] (!%p3342_p9)  ;;  %vm1118_vm0 = vcmask (!%p3342_p9), 261120  }
  0xf4   : > { %726 = sbr.rel (%p3342_p9) target bundleno = 630 (0x276), region = 176  ;;  %v729_v10 = vld [vmem:[%s637_s4] sm:$0xff] (!%p3342_p9)  ;;  %v730_v11 = vld [vmem:[%s637_s4 + $0x8] sm:$0xff] (!%p3342_p9)  ;;  %4023 = vset.pattern.permute.xlu1 (!%p3342_p9), %v4358_v15  ;;  %4022 = vset.pattern.permute.xlu0 (!%p3342_p9), %v4358_v15  ;;  %vm1127_vm1 = vcmask (!%p3342_p9), 7168   ;;  %v4359_v48 = vmov (!%p3342_p9), -inf   ;;  %v4360_v49 = vmov (!%p3342_p9), 0.0  }
  0xf5   : > { %v731_v12 = vadd.f32 (!%p3342_p9), %v729_v10, %v727_v8  ;;  %v732_v16 = vadd.f32 (!%p3342_p9), %v730_v11, %v728_v9  ;;  %1128 = vst.msk [vmem:[#allocation3] sm:$0xff] (!%p3342_p9), %vm1127_vm1, %v4359_v48  ;;  %1129 = vst.msk [vmem:[#allocation3 + $0x8] sm:$0xff] (!%p3342_p9), %vm1127_vm1, %v4359_v48 }
  0xf6   : > { %1130 = vst.msk [vmem:[#allocation3 + $0x10] sm:$0xff] (!%p3342_p9), %vm1127_vm1, %v4359_v48  ;;  %1131 = vst.msk [vmem:[#allocation3 + $0x18] sm:$0xff] (!%p3342_p9), %vm1127_vm1, %v4359_v48 }
  0xf7   : > { %v3747_v17 = vpack.c.bf16 (!%p3342_p9), %v732_v16, %v731_v12  ;;  %1132 = vst.msk [vmem:[#allocation3 + $0x20] sm:$0xff] (!%p3342_p9), %vm1127_vm1, %v4359_v48  ;;  %1133 = vst.msk [vmem:[#allocation3 + $0x28] sm:$0xff] (!%p3342_p9), %vm1127_vm1, %v4359_v48 }
  0xf8   : > { %1134 = vst.msk [vmem:[#allocation3 + $0x30] sm:$0xff] (!%p3342_p9), %vm1127_vm1, %v4359_v48  ;;  %1135 = vst.msk [vmem:[#allocation3 + $0x38] sm:$0xff] (!%p3342_p9), %vm1127_vm1, %v4359_v48 }
  0xf9   : > { %v733_v13 = vld [vmem:[%s5424_s25] sm:$0xff] (!%p3342_p9)  ;;  %3748 = vmatprep.subr.bf16.mxu0 (!%p3342_p9), %v3747_v17  ;;  %3879 = vmatprep.subr.bf16.mxu1 (!%p3342_p9), %v3747_v17  ;;  %v734_v22 = vld [vmem:[%s5424_s25 + $0x8] sm:$0xff] (!%p3342_p9)  ;;  %v735_v24 = vld [vmem:[%s5424_s25 + $0x10] sm:$0xff] (!%p3342_p9)  ;;  %1136 = vst.msk [vmem:[#allocation4] sm:$0xff] (!%p3342_p9), %vm1127_vm1, %v4360_v49 }
  0xfa   : > { %v741_v14 = vld [vmem:[%s5424_s25 + $0x40] sm:$0xff] (!%p3342_p9)  ;;  %3527 = vmatprep.mubr.f32.mxu0 (!%p3342_p9), %v733_v13  ;;  %3750 = vmatpush3.bf16.xpose.msra.mxu0 (!%p3342_p9), %v3747_v17  ;;  %v742_v23 = vld [vmem:[%s5424_s25 + $0x48] sm:$0xff] (!%p3342_p9)  ;;  %v743_v25 = vld [vmem:[%s5424_s25 + $0x50] sm:$0xff] (!%p3342_p9)  ;;  %1137 = vst.msk [vmem:[#allocation4 + $0x8] sm:$0xff] (!%p3342_p9), %vm1127_vm1, %v4360_v49 }
  0xfb   : > { %3539 = vmatprep.mubr.f32.mxu1 %v741_v14  ;;  %v757_v18 = vld [vmem:[%s5425_s28 + $0x40] sm:$0xff]  ;;  %3880 = vmatpush3.bf16.xpose.msra.mxu1 %v3747_v17  ;;  %v754_v26 = vld [vmem:[%s5425_s28 + $0x28] sm:$0xff]  ;;  %v736_v28 = vld [vmem:[%s5424_s25 + $0x18] sm:$0xff]  ;;  %1138 = vst.msk [vmem:[#allocation4 + $0x10] sm:$0xff] %vm1127_vm1, %v4360_v49 }
  0xfc   : > { %v749_v19 = vld [vmem:[%s5425_s28] sm:$0xff]  ;;  %807 = vperm.xlu1 %4023, %v757_v18   ;;  %v750_v27 = vld [vmem:[%s5425_s28 + $0x8] sm:$0xff]  ;;  %v744_v29 = vld [vmem:[%s5424_s25 + $0x58] sm:$0xff]  ;;  %1139 = vst.msk [vmem:[#allocation4 + $0x18] sm:$0xff] %vm1127_vm1, %v4360_v49 }
  0xfd   : > { %767 = vperm.xlu0 %4022, %v749_v19   ;;  %v761_v20 = vld [vmem:[%s5425_s28 + $0x60] sm:$0xff]  ;;  %v762_v32 = vld [vmem:[%s5425_s28 + $0x68] sm:$0xff]  ;;  %v739_v36 = vld [vmem:[%s5424_s25 + $0x30] sm:$0xff]  ;;  %1140 = vst.msk [vmem:[#allocation4 + $0x20] sm:$0xff] %vm1127_vm1, %v4360_v49 }
  0xfe   : > { %v753_v21 = vld [vmem:[%s5425_s28 + $0x20] sm:$0xff]  ;;  %v758_v33 = vld [vmem:[%s5425_s28 + $0x48] sm:$0xff]  ;;  %v747_v37 = vld [vmem:[%s5424_s25 + $0x70] sm:$0xff]  ;;  %1141 = vst.msk [vmem:[#allocation4 + $0x28] sm:$0xff] %vm1127_vm1, %v4360_v49 }
  0xff   : > { %v737_v30 = vld [vmem:[%s5424_s25 + $0x20] sm:$0xff]  ;;  %v738_v34 = vld [vmem:[%s5424_s25 + $0x28] sm:$0xff]  ;;  %v755_v38 = vld [vmem:[%s5425_s28 + $0x30] sm:$0xff]  ;;  %1142 = vst.msk [vmem:[#allocation4 + $0x30] sm:$0xff] %vm1127_vm1, %v4360_v49 }
 0x100   : > { %827 = vperm.xlu1 %4023, %v761_v20   ;;  %v745_v31 = vld [vmem:[%s5424_s25 + $0x60] sm:$0xff]  ;;  %v746_v35 = vld [vmem:[%s5424_s25 + $0x68] sm:$0xff]  ;;  %v751_v39 = vld [vmem:[%s5425_s28 + $0x10] sm:$0xff]  ;;  %1143 = vst.msk [vmem:[#allocation4 + $0x38] sm:$0xff] %vm1127_vm1, %v4360_v49 }
 0x101   : > { %787 = vperm.xlu0 %4022, %v753_v21   ;;  %3528 = vmatmul.mubr.f32.vlgmr.msra.gmra.mrb[0].mxu0 %v734_v22  ;;  %v740_v40 = vld [vmem:[%s5424_s25 + $0x38] sm:$0xff]  ;;  %v763_v42 = vld [vmem:[%s5425_s28 + $0x70] sm:$0xff]  ;;  %1144 = vst.msk [vmem:[#allocation5] sm:$0xff] %vm1118_vm0, %v4360_v49  ;;  %1145 = vst.msk [vmem:[#allocation5 + $0x8] sm:$0xff] %vm1118_vm0, %v4360_v49 }
 0x102   : > { %3540 = vmatmul.mubr.f32.vlgmr.msra.gmra.mrb[0].mxu1 %v742_v23  ;;  %3530 = vmatprep.mubr.f32.mxu0 %v735_v24  ;;  %v748_v41 = vld [vmem:[%s5424_s25 + $0x78] sm:$0xff]  ;;  %v759_v43 = vld [vmem:[%s5425_s28 + $0x50] sm:$0xff]  ;;  %1146 = vst.msk [vmem:[#allocation5 + $0x10] sm:$0xff] %vm1118_vm0, %v4360_v49  ;;  %1147 = vst.msk [vmem:[#allocation5 + $0x18] sm:$0xff] %vm1118_vm0, %v4360_v49 }
 0x103   : > { %3542 = vmatprep.mubr.f32.mxu1 %v743_v25  ;;  %v756_v44 = vld [vmem:[%s5425_s28 + $0x38] sm:$0xff]  ;;  %1148 = vst.msk [vmem:[#allocation5 + $0x20] sm:$0xff] %vm1118_vm0, %v4360_v49  ;;  %1149 = vst.msk [vmem:[#allocation5 + $0x28] sm:$0xff] %vm1118_vm0, %v4360_v49 }
 0x104   : > { %792 = vperm.xlu1 %4023, %v754_v26   ;;  %v752_v45 = vld [vmem:[%s5425_s28 + $0x18] sm:$0xff]  ;;  %1150 = vst.msk [vmem:[#allocation5 + $0x30] sm:$0xff] %vm1118_vm0, %v4360_v49  ;;  %1151 = vst.msk [vmem:[#allocation5 + $0x38] sm:$0xff] %vm1118_vm0, %v4360_v49 }
 0x105   : > { %772 = vperm.xlu0 %4022, %v750_v27   ;;  %3531 = vmatmul.mubr.f32.gmra.mrb[2].mxu0 %v736_v28  ;;  %v764_v46 = vld [vmem:[%s5425_s28 + $0x78] sm:$0xff] }
 0x106   : > { %3543 = vmatmul.mubr.f32.gmra.mrb[2].mxu1 %v744_v29  ;;  %3533 = vmatprep.mubr.f32.mxu0 %v737_v30  ;;  %v760_v47 = vld [vmem:[%s5425_s28 + $0x58] sm:$0xff] }
 0x107   : > { %3545 = vmatprep.mubr.f32.mxu1 %v745_v31 }
 0x108   : > { %832 = vperm.xlu1 %4023, %v762_v32  }
 0x109   : > { %812 = vperm.xlu0 %4022, %v758_v33   ;;  %3534 = vmatmul.mubr.f32.gmra.mrb[4].mxu0 %v738_v34 }
 0x10a   : > { %3546 = vmatmul.mubr.f32.gmra.mrb[4].mxu1 %v746_v35  ;;  %3536 = vmatprep.mubr.f32.mxu0 %v739_v36 }
 0x10b   : > { %3548 = vmatprep.mubr.f32.mxu1 %v747_v37 }
 0x10c   : > { %797 = vperm.xlu1 %4023, %v755_v38  }
 0x10d   : > { %777 = vperm.xlu0 %4022, %v751_v39   ;;  %3537 = vmatmul.mubr.f32.gmra.mrb[6].mxu0 %v740_v40 }
 0x10e   : > { %3549 = vmatmul.mubr.f32.gmra.mrb[6].mxu1 %v748_v41 }
 0x110   : > { %837 = vperm.xlu1 %4023, %v763_v42  }
 0x111   : > { %817 = vperm.xlu0 %4022, %v759_v43  }
 0x114   : > { %802 = vperm.xlu1 %4023, %v756_v44  }
 0x115   : > { %782 = vperm.xlu0 %4022, %v752_v45  }
 0x118   : > { %842 = vperm.xlu1 %4023, %v764_v46  }
 0x119   : > { %822 = vperm.xlu0 %4022, %v760_v47  }
 0x17b   : > { %v808_v52 = vpop.permute.xlu1 %807 }
 0x17c   : > { %v768_v50 = vpop.permute.xlu0 %767 }
 0x17f   : > { %v828_v54 = vpop.permute.xlu1 %827 }
 0x180   : > { %v788_v51 = vpop.permute.xlu0 %787 }
 0x183   : > { %v793_v56 = vpop.permute.xlu1 %792 }
 0x184   : > { %v773_v53 = vpop.permute.xlu0 %772 }
 0x187   : > { %v833_v58 = vpop.permute.xlu1 %832 }
 0x188   : > { %v813_v55 = vpop.permute.xlu0 %812 }
 0x18b   : > { %v798_v6 = vpop.permute.xlu1 %797 }
 0x18c   : > { %v778_v57 = vpop.permute.xlu0 %777 }
 0x18f   : > { %v838_v20 = vpop.permute.xlu1 %837 }
 0x190   : > { %v818_v0 = vpop.permute.xlu0 %817 }
 0x193   : > { %v803_v23 = vpop.permute.xlu1 %802 }
 0x194   : > { %v783_v13 = vpop.permute.xlu0 %782 }
 0x197   : > { %v843_v32 = vpop.permute.xlu1 %842 }
 0x198   : > { %v823_v28 = vpop.permute.xlu0 %822 }
 0x1d4   : > { %v3529_v59 = vpop.f32.mrb[0].mxu0 }
 0x1d5   : > { %v3541_v60 = vpop.f32.mrb[0].mxu1  ;;  %v911_v61 = vpop.f32.mrb[1].mxu0  ;;  %v917_v5 = vadd.f32 %v3529_v59, %v773_v53 }
 0x1d6   : > { %v951_v62 = vpop.f32.mrb[1].mxu1  ;;  %v912_v63 = vadd.f32 %v911_v61, %v768_v50  ;;  %v957_v24 = vadd.f32 %v3541_v60, %v813_v55 }
 0x1d7   : > { %v952_v21 = vadd.f32 %v951_v62, %v808_v52 }
 0x1d8   : > { %v3532_v1 = vpop.f32.mrb[2].mxu0  ;;  %990 = vxpose.xlu0.b32.start [1/4] (short) (narrow) %v912_v63, 16 }
 0x1d9   : > { %v3544_v2 = vpop.f32.mrb[2].mxu1  ;;  %v921_v3 = vpop.f32.mrb[3].mxu0  ;;  %v927_v18 = vadd.f32 %v3532_v1, %v783_v13 }
 0x1da   : > { %v961_v4 = vpop.f32.mrb[3].mxu1  ;;  %v922_v11 = vadd.f32 %v921_v3, %v778_v57  ;;  %v967_v29 = vadd.f32 %v3544_v2, %v823_v28 }
 0x1db   : > { %v962_v26 = vadd.f32 %v961_v4, %v818_v0 }
 0x1dc   : > { %v3535_v7 = vpop.f32.mrb[4].mxu0  ;;  %991 = vxpose.xlu0.b32.cont [2/4] (short) (narrow) %v917_v5, 16 }
 0x1dd   : > { %v3547_v8 = vpop.f32.mrb[4].mxu1  ;;  %v931_v9 = vpop.f32.mrb[5].mxu0  ;;  %v937_v19 = vadd.f32 %v3535_v7, %v793_v56 }
 0x1de   : > { %v971_v10 = vpop.f32.mrb[5].mxu1  ;;  %v932_v12 = vadd.f32 %v931_v9, %v788_v51  ;;  %v977_v30 = vadd.f32 %v3547_v8, %v833_v58 }
 0x1df   : > { %v972_v27 = vadd.f32 %v971_v10, %v828_v54 }
 0x1e0   : > { %v3538_v14 = vpop.f32.mrb[6].mxu0  ;;  %1022 = vxpose.xlu1.b32.start [1/4] (short) (narrow) %v932_v12, 16  ;;  %992 = vxpose.xlu0.b32.cont [3/4] (short) (narrow) %v922_v11, 16 }
 0x1e1   : > { %v3550_v15 = vpop.f32.mrb[6].mxu1  ;;  %v941_v16 = vpop.f32.mrb[7].mxu0  ;;  %v947_v25 = vadd.f32 %v3538_v14, %v803_v23 }
 0x1e2   : > { %v981_v17 = vpop.f32.mrb[7].mxu1  ;;  %v942_v22 = vadd.f32 %v941_v16, %v798_v6  ;;  %v987_v33 = vadd.f32 %v3550_v15, %v843_v32 }
 0x1e3   : > { %v982_v31 = vadd.f32 %v981_v17, %v838_v20 }
 0x1e4   : > { %1023 = vxpose.xlu1.b32.cont [2/4] (short) (narrow) %v937_v19, 16  ;;  %993 = vxpose.xlu0.b32.end [4/4] (short) (narrow) %v927_v18, 16 }
 0x1e8   : > { %1024 = vxpose.xlu1.b32.cont [3/4] (short) (narrow) %v942_v22, 16  ;;  %1054 = vxpose.xlu0.b32.start [1/4] (short) (narrow) %v952_v21, 16 }
 0x1ec   : > { %1025 = vxpose.xlu1.b32.end [4/4] (short) (narrow) %v947_v25, 16  ;;  %1055 = vxpose.xlu0.b32.cont [2/4] (short) (narrow) %v957_v24, 16 }
 0x1f0   : > { %1086 = vxpose.xlu1.b32.start [1/4] (short) (narrow) %v972_v27, 16  ;;  %1056 = vxpose.xlu0.b32.cont [3/4] (short) (narrow) %v962_v26, 16 }
 0x1f4   : > { %1087 = vxpose.xlu1.b32.cont [2/4] (short) (narrow) %v977_v30, 16  ;;  %1057 = vxpose.xlu0.b32.end [4/4] (short) (narrow) %v967_v29, 16 }
 0x1f8   : > { %1088 = vxpose.xlu1.b32.cont [3/4] (short) (narrow) %v982_v31, 16 }
 0x1fc   : > { %1089 = vxpose.xlu1.b32.end [4/4] (short) (narrow) %v987_v33, 16 }
 0x258   : > { %v1006_v34 = vpop.trf.xlu0 }
 0x259   : > { %1119 = vst.msk [vmem:[#allocation2] sm:$0xff] %vm1118_vm0, %v1006_v34 }
 0x25c   : > { %v1007_v35 = vpop.trf.xlu0 }
 0x25d   : > { %1120 = vst.msk [vmem:[#allocation2 + $0x8] sm:$0xff] %vm1118_vm0, %v1007_v35 }
 0x260   : > { %v1038_v36 = vpop.trf.xlu1 }
 0x261   : > { %1121 = vst.msk [vmem:[#allocation2 + $0x10] sm:$0xff] %vm1118_vm0, %v1038_v36 }
 0x264   : > { %v1039_v37 = vpop.trf.xlu1 }
 0x265   : > { %1122 = vst.msk [vmem:[#allocation2 + $0x18] sm:$0xff] %vm1118_vm0, %v1039_v37 }
 0x268   : > { %v1070_v38 = vpop.trf.xlu0 }
 0x269   : > { %1123 = vst.msk [vmem:[#allocation2 + $0x20] sm:$0xff] %vm1118_vm0, %v1070_v38 }
 0x26c   : > { %v1071_v39 = vpop.trf.xlu0 }
 0x26d   : > { %1124 = vst.msk [vmem:[#allocation2 + $0x28] sm:$0xff] %vm1118_vm0, %v1071_v39 }
 0x270   : > { %v1102_v40 = vpop.trf.xlu1 }
 0x271   : > { %1125 = vst.msk [vmem:[#allocation2 + $0x30] sm:$0xff] %vm1118_vm0, %v1102_v40 }
 0x274   : > { %v1103_v41 = vpop.trf.xlu1 }
 0x275   : > { %1126 = vst.msk [vmem:[#allocation2 + $0x38] sm:$0xff] %vm1118_vm0, %v1103_v41 }
 0x276 PF: > { %v1152_v42 = vld [vmem:[%s4762_s9] sm:$0xff]  ;;  %v1153_v43 = vld [vmem:[%s4762_s9 + $0x8] sm:$0xff]  ;;  %v1154_v47 = vld [vmem:[%s4762_s9 + $0x10] sm:$0xff]  ;;  %v4361_v49 = vmov 0   ;;  %s5426_s18 = sld [smem:[#allocation40_spill]]  ;;  %vm1686_vm2 = vcmask 261120  }
 0x277   : > { %v1156_v44 = vld [vmem:[%s4764_s27] sm:$0xff]  ;;  %v1157_v45 = vld [vmem:[%s4764_s27 + $0x8] sm:$0xff]  ;;  %v1155_v48 = vld [vmem:[%s4762_s9 + $0x18] sm:$0xff]  ;;  %4024 = vset.pattern.permute.xlu0 %v4361_v49  ;;  %4025 = vset.pattern.permute.xlu1 %v4361_v49  ;;  %v3759_v62 = vpack.c.bf16 %v1153_v43, %v1152_v42  ;;  %s5428_s11 = sld [smem:[#allocation41_spill]]  ;;  %vm2187_vm3 = vcmask 7168   ;;  %s5431_s16 = sld [smem:[#allocation26_spill]] }
 0x278   : > { %v1160_v46 = vadd.f32 %v1156_v44, %v1152_v42  ;;  %v1161_v50 = vadd.f32 %v1157_v45, %v1153_v43  ;;  %v1158_v51 = vld [vmem:[%s4764_s27 + $0x10] sm:$0xff]  ;;  %v1159_v52 = vld [vmem:[%s4764_s27 + $0x18] sm:$0xff]  ;;  %v1164_v53 = vld [vmem:[#allocation13] sm:$0xff]  ;;  %v3763_v5 = vpack.c.bf16 %v1155_v48, %v1154_v47 }
 0x279   : > { %v1162_v54 = vadd.f32 %v1158_v51, %v1154_v47  ;;  %v1163_v55 = vadd.f32 %v1159_v52, %v1155_v48  ;;  %3559 = vmatprep.mubr.f32.mxu0 %v1164_v53  ;;  %3760 = vmatprep.subr.bf16.mxu1 %v3759_v62  ;;  %v1165_v2 = vld [vmem:[#allocation13 + $0x8] sm:$0xff]  ;;  %v1166_v4 = vld [vmem:[#allocation13 + $0x10] sm:$0xff]  ;;  %v1167_v7 = vld [vmem:[#allocation13 + $0x18] sm:$0xff] }
 0x27a   : > { %v3751_v56 = vpack.c.bf16 %v1161_v50, %v1160_v46  ;;  %3762 = vmatpush3.bf16.xpose.msra.mxu1 %v3759_v62  ;;  %v1168_v9 = vld [vmem:[#allocation13 + $0x20] sm:$0xff]  ;;  %v1169_v11 = vld [vmem:[#allocation13 + $0x28] sm:$0xff]  ;;  %v1170_v13 = vld [vmem:[#allocation13 + $0x30] sm:$0xff] }
 0x27b   : > { %v3755_v57 = vpack.c.bf16 %v1163_v55, %v1162_v54  ;;  %3764 = vmatprep.subr.bf16.mxu1 %v3763_v5  ;;  %v1421_v14 = vld [vmem:[#allocation14] sm:$0xff]  ;;  %v1422_v15 = vld [vmem:[#allocation14 + $0x8] sm:$0xff]  ;;  %v1171_v17 = vld [vmem:[#allocation13 + $0x38] sm:$0xff] }
 0x27c   : > { %3752 = vmatprep.subr.bf16.mxu0 %v3751_v56  ;;  %s5427_s23 = smov %s5426_s18  ;;  %v1180_v58 = vld [vmem:[%s5426_s18] sm:$0xff]  ;;  %3591 = vmatprep.mubr.f32.mxu1 %v1421_v14  ;;  %v1423_v20 = vld [vmem:[#allocation14 + $0x10] sm:$0xff]  ;;  %v1424_v21 = vld [vmem:[#allocation14 + $0x18] sm:$0xff] }
 0x27d   : > { %3754 = vmatpush3.bf16.xpose.msra.mxu0 %v3751_v56  ;;  %1198 = vperm.xlu0 %4024, %v1180_v58   ;;  %v1184_v59 = vld [vmem:[%s5427_s23 + $0x20] sm:$0xff]  ;;  %v1181_v60 = vld [vmem:[%s5427_s23 + $0x8] sm:$0xff]  ;;  %v1182_v63 = vld [vmem:[%s5427_s23 + $0x10] sm:$0xff]  ;;  %p3375_p7 = scmp.ne.s32.totalorder %s5431_s16, 1 }
 0x27e   : > { %3756 = vmatprep.subr.bf16.mxu0 %v3755_v57  ;;  %1218 = vperm.xlu1 %4025, %v1184_v59   ;;  %v1185_v61 = vld [vmem:[%s5427_s23 + $0x28] sm:$0xff]  ;;  %v1183_v0 = vld [vmem:[%s5427_s23 + $0x18] sm:$0xff]  ;;  %v1186_v1 = vld [vmem:[%s5427_s23 + $0x30] sm:$0xff]  ;;  %s5432_s24 = sld [smem:[#allocation42_spill]] (!%p3375_p7)  ;;  %s5433_s9 = sld [smem:[#allocation43_spill]] (!%p3375_p7) }
 0x27f   : > { %v1187_v3 = vld [vmem:[%s5427_s23 + $0x38] sm:$0xff]  ;;  %v1188_v6 = vld [vmem:[%s5427_s23 + $0x40] sm:$0xff]  ;;  %v1189_v8 = vld [vmem:[%s5427_s23 + $0x48] sm:$0xff]  ;;  %s5434_s27 = sld [smem:[#allocation44_spill]] (!%p3375_p7) }
 0x280   : > { %v1192_v10 = vld [vmem:[%s5427_s23 + $0x60] sm:$0xff]  ;;  %v1193_v12 = vld [vmem:[%s5427_s23 + $0x68] sm:$0xff]  ;;  %v1190_v16 = vld [vmem:[%s5427_s23 + $0x50] sm:$0xff] }
 0x281   : > { %1203 = vperm.xlu0 %4024, %v1181_v60   ;;  %v1191_v18 = vld [vmem:[%s5427_s23 + $0x58] sm:$0xff]  ;;  %v1172_v19 = vld [vmem:[#allocation13 + $0x40] sm:$0xff]  ;;  %v1194_v22 = vld [vmem:[%s5427_s23 + $0x70] sm:$0xff] }
 0x282   : > { %1223 = vperm.xlu1 %4025, %v1185_v61   ;;  %3766 = vmatpush3.bf16.xpose.msra.mxu1 %v3763_v5  ;;  %v1173_v23 = vld [vmem:[#allocation13 + $0x48] sm:$0xff]  ;;  %v1195_v24 = vld [vmem:[%s5427_s23 + $0x78] sm:$0xff]  ;;  %v1174_v25 = vld [vmem:[#allocation13 + $0x50] sm:$0xff] }
 0x283   : > { %v1425_v26 = vld [vmem:[#allocation14 + $0x20] sm:$0xff]  ;;  %v1426_v27 = vld [vmem:[#allocation14 + $0x28] sm:$0xff]  ;;  %v1175_v28 = vld [vmem:[#allocation13 + $0x58] sm:$0xff] }
 0x284   : > { %v1176_v29 = vld [vmem:[#allocation13 + $0x60] sm:$0xff]  ;;  %v1177_v30 = vld [vmem:[#allocation13 + $0x68] sm:$0xff]  ;;  %v1178_v31 = vld [vmem:[#allocation13 + $0x70] sm:$0xff] }
 0x285   : > { %3758 = vmatpush3.bf16.xpose.msra.mxu0 %v3755_v57  ;;  %1208 = vperm.xlu0 %4024, %v1182_v63   ;;  %v1179_v32 = vld [vmem:[#allocation13 + $0x78] sm:$0xff]  ;;  %v1427_v33 = vld [vmem:[#allocation14 + $0x30] sm:$0xff]  ;;  %v1429_v35 = vld [vmem:[#allocation14 + $0x40] sm:$0xff] }
 0x286   : > { %1213 = vperm.xlu1 %4025, %v1183_v0   ;;  %v1428_v34 = vld [vmem:[#allocation14 + $0x38] sm:$0xff]  ;;  %v1430_v36 = vld [vmem:[#allocation14 + $0x48] sm:$0xff]  ;;  %v1431_v37 = vld [vmem:[#allocation14 + $0x50] sm:$0xff] }
 0x287   : > { %v1432_v38 = vld [vmem:[#allocation14 + $0x58] sm:$0xff]  ;;  %v1678_v39 = vld [vmem:[#allocation2] sm:$0xff]  ;;  %v1434_v41 = vld [vmem:[#allocation14 + $0x68] sm:$0xff] }
 0x288   : > { %v1433_v40 = vld [vmem:[#allocation14 + $0x60] sm:$0xff]  ;;  %v1435_v42 = vld [vmem:[#allocation14 + $0x70] sm:$0xff]  ;;  %v1436_v43 = vld [vmem:[#allocation14 + $0x78] sm:$0xff] }
 0x289   : > { %1228 = vperm.xlu0 %4024, %v1186_v1   ;;  %3592 = vmatmul.mubr.f32.vlgmr.msra.gmra.mrb[0].mxu1 %v1422_v15  ;;  %v1680_v44 = vld [vmem:[#allocation2 + $0x10] sm:$0xff]  ;;  %vm5120_vm4 = vmpackc.low %vm1686_vm2, %vm1686_vm2 }
 0x28a   : > { %1233 = vperm.xlu1 %4025, %v1187_v3   ;;  %3594 = vmatprep.mubr.f32.mxu1 %v1423_v20 }
 0x28c   : > { %3560 = vmatmul.mubr.f32.vlgmr.msra.gmra.mrb[0].mxu0 %v1165_v2 }
 0x28d   : > { %3562 = vmatprep.mubr.f32.mxu0 %v1166_v4  ;;  %1238 = vperm.xlu0 %4024, %v1188_v6  }
 0x28e   : > { %1243 = vperm.xlu1 %4025, %v1189_v8   ;;  %3595 = vmatmul.mubr.f32.gmra.mrb[2].mxu1 %v1424_v21 }
 0x28f   : > { %3597 = vmatprep.mubr.f32.mxu1 %v1425_v26 }
 0x290   : > { %3563 = vmatmul.mubr.f32.gmra.mrb[2].mxu0 %v1167_v7  ;;  %v1679_v7 = vld [vmem:[#allocation2 + $0x8] sm:$0xff] }
 0x291   : > { %3565 = vmatprep.mubr.f32.mxu0 %v1168_v9  ;;  %1258 = vperm.xlu0 %4024, %v1192_v10   ;;  %v1682_v10 = vld [vmem:[#allocation2 + $0x20] sm:$0xff] }
 0x292   : > { %1263 = vperm.xlu1 %4025, %v1193_v12   ;;  %3598 = vmatmul.mubr.f32.gmra.mrb[4].mxu1 %v1426_v27 }
 0x293   : > { %3600 = vmatprep.mubr.f32.mxu1 %v1427_v33 }
 0x294   : > { %3566 = vmatmul.mubr.f32.gmra.mrb[4].mxu0 %v1169_v11 }
 0x295   : > { %3568 = vmatprep.mubr.f32.mxu0 %v1170_v13  ;;  %1248 = vperm.xlu0 %4024, %v1190_v16  }
 0x296   : > { %1253 = vperm.xlu1 %4025, %v1191_v18   ;;  %3601 = vmatmul.mubr.f32.gmra.mrb[6].mxu1 %v1428_v34 }
 0x297   : > { %3603 = vmatprep.mubr.f32.mxu1 %v1429_v35 }
 0x298   : > { %3569 = vmatmul.mubr.f32.gmra.mrb[6].mxu0 %v1171_v17 }
 0x299   : > { %3571 = vmatprep.mubr.f32.mxu0 %v1172_v19  ;;  %1268 = vperm.xlu0 %4024, %v1194_v22  }
 0x29a   : > { %1273 = vperm.xlu1 %4025, %v1195_v24   ;;  %3604 = vmatmul.mubr.f32.gmra.mrb[8].mxu1 %v1430_v36 }
 0x29b   : > { %3606 = vmatprep.mubr.f32.mxu1 %v1431_v37 }
 0x29c   : > { %3572 = vmatmul.mubr.f32.gmra.mrb[8].mxu0 %v1173_v23 }
 0x29d   : > { %3574 = vmatprep.mubr.f32.mxu0 %v1174_v25  ;;  %v1681_v25 = vld [vmem:[#allocation2 + $0x18] sm:$0xff] }
 0x29e   : > { %3607 = vmatmul.mubr.f32.gmra.mrb[10].mxu1 %v1432_v38 }
 0x29f   : > { %3609 = vmatprep.mubr.f32.mxu1 %v1433_v40 }
 0x2a0   : > { %3575 = vmatmul.mubr.f32.gmra.mrb[10].mxu0 %v1175_v28 }
 0x2a1   : > { %3577 = vmatprep.mubr.f32.mxu0 %v1176_v29  ;;  %v1684_v29 = vld [vmem:[#allocation2 + $0x30] sm:$0xff] }
 0x2a2   : > { %3610 = vmatmul.mubr.f32.gmra.mrb[12].mxu1 %v1434_v41 }
 0x2a3   : > { %3612 = vmatprep.mubr.f32.mxu1 %v1435_v42 }
 0x2a4   : > { %3578 = vmatmul.mubr.f32.gmra.mrb[12].mxu0 %v1177_v30 }
 0x2a5   : > { %3580 = vmatprep.mubr.f32.mxu0 %v1178_v31 }
 0x2a6   : > { %3613 = vmatmul.mubr.f32.gmra.mrb[14].mxu1 %v1436_v43 }
 0x2a7   : > { %3634 = vmatprep.mubr.msk.f32.mxu1 %vm1686_vm2, %v1680_v44 }
 0x2a8   : > { %3581 = vmatmul.mubr.f32.gmra.mrb[14].mxu0 %v1179_v32 }
 0x2a9   : > { %3623 = vmatprep.mubr.msk.f32.mxu0 %vm1686_vm2, %v1678_v39  ;;  %v1683_v39 = vld [vmem:[#allocation2 + $0x28] sm:$0xff] }
 0x2fc   : > { %v1199_v45 = vpop.permute.xlu0 %1198 }
 0x2fd   : > { %v1219_v46 = vpop.permute.xlu1 %1218 }
 0x300   : > { %v1204_v47 = vpop.permute.xlu0 %1203 }
 0x301   : > { %v1224_v48 = vpop.permute.xlu1 %1223 }
 0x304   : > { %v1209_v49 = vpop.permute.xlu0 %1208 }
 0x305   : > { %v1214_v50 = vpop.permute.xlu1 %1213 }
 0x308   : > { %v1229_v52 = vpop.permute.xlu0 %1228 }
 0x309   : > { %v1234_v55 = vpop.permute.xlu1 %1233 }
 0x30c   : > { %v1239_v62 = vpop.permute.xlu0 %1238 }
 0x30d   : > { %v1244_v63 = vpop.permute.xlu1 %1243 }
 0x310   : > { %v1259_v17 = vpop.permute.xlu0 %1258 }
 0x311   : > { %v1264_v14 = vpop.permute.xlu1 %1263 }
 0x314   : > { %v1249_v30 = vpop.permute.xlu0 %1248 }
 0x315   : > { %v1254_v26 = vpop.permute.xlu1 %1253 }
 0x318   : > { %v1269_v43 = vpop.permute.xlu0 %1268 }
 0x319   : > { %v1274_v40 = vpop.permute.xlu1 %1273 }
 0x35c   : > { %v4965_v4 = vpop.f32.mrb[0].mxu1 }
 0x35d   : > { %v4967_v6 = vpop.f32.mrb[1].mxu1 }
 0x35f   : > { %v3561_v51 = vpop.f32.mrb[0].mxu0 }
 0x360   : > { %v1348_v53 = vadd.f32 %v3561_v51, %v1204_v47  ;;  %v1342_v54 = vpop.f32.mrb[1].mxu0 }
 0x361   : > { %v1343_v56 = vadd.f32 %v1342_v54, %v1199_v45  ;;  %v4969_v13 = vpop.f32.mrb[2].mxu1 }
 0x362   : > { %v4972_v16 = vpop.f32.mrb[3].mxu1 }
 0x363   : > { %v3767_v57 = vpack.c.bf16 %v1348_v53, %v1343_v56  ;;  %v3564_v58 = vpop.f32.mrb[2].mxu0 }
 0x364   : > { %v1358_v59 = vadd.f32 %v3564_v58, %v1214_v50  ;;  %v1352_v60 = vpop.f32.mrb[3].mxu0 }
 0x365   : > { %v1353_v61 = vadd.f32 %v1352_v60, %v1209_v49  ;;  %3768 = vmatprep.subr.bf16.mxu0 %v3767_v57  ;;  %v4975_v22 = vpop.f32.mrb[4].mxu1 }
 0x366   : > { %3770 = vmatpush3.bf16.msra.mxu0 %v3767_v57  ;;  %v4977_v24 = vpop.f32.mrb[5].mxu1 }
 0x367   : > { %v3771_v0 = vpack.c.bf16 %v1358_v59, %v1353_v61  ;;  %v3567_v1 = vpop.f32.mrb[4].mxu0 }
 0x368   : > { %v1368_v2 = vadd.f32 %v3567_v1, %v1224_v48  ;;  %v1362_v3 = vpop.f32.mrb[5].mxu0  ;;  %v1685_v48 = vld [vmem:[#allocation2 + $0x38] sm:$0xff] }
 0x369   : > { %v1363_v5 = vadd.f32 %v1362_v3, %v1219_v46  ;;  %3772 = vmatprep.subr.bf16.mxu0 %v3771_v0  ;;  %v4983_v49 = vpop.f32.mrb[6].mxu1 }
 0x36a   : > { %3774 = vmatpush3.bf16.msra.mxu0 %v3771_v0  ;;  %v4985_v50 = vpop.f32.mrb[7].mxu1 }
 0x36b   : > { %v3775_v8 = vpack.c.bf16 %v1368_v2, %v1363_v5  ;;  %v3570_v9 = vpop.f32.mrb[6].mxu0 }
 0x36c   : > { %v1378_v11 = vadd.f32 %v3570_v9, %v1234_v55  ;;  %v1372_v12 = vpop.f32.mrb[7].mxu0 }
 0x36d   : > { %v1373_v15 = vadd.f32 %v1372_v12, %v1229_v52  ;;  %3624 = vmatmul.mubr.msk.f32.vlgmr.msra.gmra.mrb[16].mxu0 %vm1686_vm2, %v1679_v7  ;;  %3776 = vmatprep.subr.bf16.mxu1 %v3775_v8  ;;  %v4987_v51 = vpop.f32.mrb[8].mxu1 }
 0x36e   : > { %3778 = vmatpush3.bf16.msra.mxu1 %v3775_v8  ;;  %3645 = vmatprep.mubr.msk.f32.mxu0 %vm1686_vm2, %v1682_v10  ;;  %v4989_v52 = vpop.f32.mrb[9].mxu1 }
 0x36f   : > { %v3779_v18 = vpack.c.bf16 %v1378_v11, %v1373_v15  ;;  %v3573_v19 = vpop.f32.mrb[8].mxu0  ;;  %v1441_v15 = vld [vmem:[%s5428_s11 + $0x20] sm:$0xff] }
 0x370   : > { %v1388_v20 = vadd.f32 %v3573_v19, %v1244_v63  ;;  %v1382_v21 = vpop.f32.mrb[9].mxu0  ;;  %v1438_v19 = vld [vmem:[%s5428_s11 + $0x8] sm:$0xff] }
 0x371   : > { %v1383_v23 = vadd.f32 %v1382_v21, %v1239_v62  ;;  %3780 = vmatprep.subr.bf16.mxu1 %v3779_v18  ;;  %v4991_v53 = vpop.f32.mrb[10].mxu1  ;;  %v1439_v21 = vld [vmem:[%s5428_s11 + $0x10] sm:$0xff] }
 0x372   : > { %3782 = vmatpush3.bf16.msra.mxu1 %v3779_v18  ;;  %v4993_v54 = vpop.f32.mrb[11].mxu1  ;;  %v1440_v18 = vld [vmem:[%s5428_s11 + $0x18] sm:$0xff] }
 0x373   : > { %v3783_v27 = vpack.c.bf16 %v1388_v20, %v1383_v23  ;;  %v3576_v28 = vpop.f32.mrb[10].mxu0  ;;  %v1444_v20 = vld [vmem:[%s5428_s11 + $0x38] sm:$0xff]  ;;  %v1446_v23 = vld [vmem:[%s5428_s11 + $0x48] sm:$0xff] }
 0x374   : > { %v1398_v31 = vadd.f32 %v3576_v28, %v1254_v26  ;;  %v1392_v32 = vpop.f32.mrb[11].mxu0  ;;  %v1445_v26 = vld [vmem:[%s5428_s11 + $0x40] sm:$0xff] }
 0x375   : > { %v1393_v33 = vadd.f32 %v1392_v32, %v1249_v30  ;;  %3784 = vmatprep.subr.bf16.mxu0 %v3783_v27  ;;  %3635 = vmatmul.mubr.msk.f32.vlgmr.msra.gmra.mrb[16].mxu1 %vm1686_vm2, %v1681_v25  ;;  %v4995_v55 = vpop.f32.mrb[12].mxu1  ;;  %v1443_v25 = vld [vmem:[%s5428_s11 + $0x30] sm:$0xff]  ;;  %v2012_v30 = vld [vmem:[#allocation3 + $0x8] sm:$0xff] }
 0x376   : > { %3786 = vmatpush3.bf16.msra.mxu0 %v3783_v27  ;;  %3656 = vmatprep.mubr.msk.f32.mxu1 %vm1686_vm2, %v1684_v29  ;;  %v4997_v56 = vpop.f32.mrb[13].mxu1  ;;  %v2011_v27 = vld [vmem:[#allocation3] sm:$0xff] }
 0x377   : > { %v3787_v34 = vpack.c.bf16 %v1398_v31, %v1393_v33  ;;  %v3579_v35 = vpop.f32.mrb[12].mxu0  ;;  %v5066_v33 = vld [vmem:[#allocation3 + $0x18] sm:$0xff] }
 0x378   : > { %v1408_v36 = vadd.f32 %v3579_v35, %v1264_v14  ;;  %v1402_v37 = vpop.f32.mrb[13].mxu0  ;;  %v1437_v14 = vld [vmem:[%s5428_s11] sm:$0xff] }
 0x379   : > { %v1403_v38 = vadd.f32 %v1402_v37, %v1259_v17  ;;  %3788 = vmatprep.subr.bf16.mxu0 %v3787_v34  ;;  %v4999_v57 = vpop.f32.mrb[14].mxu1  ;;  %v1442_v17 = vld [vmem:[%s5428_s11 + $0x28] sm:$0xff] }
 0x37a   : > { %3790 = vmatpush3.bf16.msra.mxu0 %v3787_v34  ;;  %v5001_v58 = vpop.f32.mrb[15].mxu1  ;;  %v2013_v34 = vld [vmem:[#allocation3 + $0x10] sm:$0xff] }
 0x37b   : > { %v3791_v41 = vpack.c.bf16 %v1408_v36, %v1403_v38  ;;  %v3582_v42 = vpop.f32.mrb[14].mxu0 }
 0x37c   : > { %v1418_v44 = vadd.f32 %v3582_v42, %v1274_v40  ;;  %v1412_v45 = vpop.f32.mrb[15].mxu0  ;;  %v5075_v40 = vld [vmem:[#allocation3 + $0x28] sm:$0xff] }
 0x37d   : > { %v1413_v46 = vadd.f32 %v1412_v45, %v1269_v43  ;;  %3646 = vmatmul.mubr.msk.f32.vlgmr.msra.gmra.mrb[18].mxu0 %vm1686_vm2, %v1683_v39  ;;  %3792 = vmatprep.subr.bf16.mxu1 %v3791_v41  ;;  %v1449_v39 = vld [vmem:[%s5428_s11 + $0x60] sm:$0xff]  ;;  %v1450_v45 = vld [vmem:[%s5428_s11 + $0x68] sm:$0xff] }
 0x37e   : > { %3794 = vmatpush3.bf16.msra.mxu1 %v3791_v41 }
 0x37f   : > { %v3795_v47 = vpack.c.bf16 %v1418_v44, %v1413_v46  ;;  %v1447_v44 = vld [vmem:[%s5428_s11 + $0x50] sm:$0xff]  ;;  %v2015_v46 = vld [vmem:[#allocation3 + $0x20] sm:$0xff] }
 0x381   : > { %3796 = vmatprep.subr.bf16.mxu1 %v3795_v47 }
 0x382   : > { %3798 = vmatpush3.bf16.msra.mxu1 %v3795_v47 }
 0x385   : > { %3657 = vmatmul.mubr.msk.f32.vlgmr.msra.gmra.mrb[18].mxu1 %vm1686_vm2, %v1685_v48 }
 0x440   : > { %v5003_v59 = vpop.f32.mrb[16].mxu0 }
 0x441   : > { %v5005_v60 = vpop.f32.mrb[17].mxu0  ;;  %v2022_v62 = vsel %vm1686_vm2, %v5003_v59, -inf }
 0x442   : > { %v2019_v61 = vsel %vm1686_vm2, %v5005_v60, -inf }
 0x443   : > { %2020 = vmax.xlane.f32.xlu0 %v2019_v61 }
 0x447   : > { %2023 = vmax.xlane.f32.xlu0 %v2022_v62  ;;  %v1448_v62 = vld [vmem:[%s5428_s11 + $0x58] sm:$0xff] }
 0x448   : > { %v5011_v63 = vpop.f32.mrb[16].mxu1 }
 0x449   : > { %v2028_v0 = vsel %vm1686_vm2, %v5011_v63, -inf  ;;  %v5015_v1 = vpop.f32.mrb[17].mxu1 }
 0x44a   : > { %v2025_v2 = vsel %vm1686_vm2, %v5015_v1, -inf }
 0x44b   : > { %2029 = vmax.xlane.f32.xlu0 %v2028_v0  ;;  %2026 = vmax.xlane.f32.xlu1 %v2025_v2  ;;  %v5092_v2 = vld [vmem:[#allocation3 + $0x30] sm:$0xff] }
 0x450   : > { %v5019_v3 = vpop.f32.mrb[18].mxu0 }
 0x451   : > { %v2034_v5 = vsel %vm1686_vm2, %v5019_v3, -inf  ;;  %v5023_v7 = vpop.f32.mrb[19].mxu0 }
 0x452   : > { %2035 = vmax.xlane.f32.xlu1 %v2034_v5  ;;  %v2031_v8 = vsel %vm1686_vm2, %v5023_v7, -inf }
 0x456   : > { %2032 = vmax.xlane.f32.xlu1 %v2031_v8 }
 0x458   : > { %v5027_v9 = vpop.f32.mrb[18].mxu1 }
 0x459   : > { %v5029_v10 = vpop.f32.mrb[19].mxu1  ;;  %v2040_v12 = vsel %vm1686_vm2, %v5027_v9, -inf }
 0x45a   : > { %v2037_v11 = vsel %vm1686_vm2, %v5029_v10, -inf }
 0x45b   : > { %2038 = vmax.xlane.f32.xlu0 %v2037_v11 }
 0x45f   : > { %2041 = vmax.xlane.f32.xlu0 %v2040_v12 }
 0x467   : > { %1455 = vperm.xlu1 %4025, %v1437_v14  }
 0x46b   : > { %1475 = vperm.xlu1 %4025, %v1441_v15   ;;  %v5098_v15 = vld [vmem:[#allocation3 + $0x38] sm:$0xff] }
 0x46f   : > { %1480 = vperm.xlu1 %4025, %v1442_v17  }
 0x473   : > { %1470 = vperm.xlu1 %4025, %v1440_v18  }
 0x475   : > { %1460 = vperm.xlu0 %4024, %v1438_v19  }
 0x477   : > { %1490 = vperm.xlu1 %4025, %v1444_v20  }
 0x479   : > { %1465 = vperm.xlu0 %4024, %v1439_v21  }
 0x47b   : > { %1500 = vperm.xlu1 %4025, %v1446_v23   ;;  %v1451_v23 = vld [vmem:[%s5428_s11 + $0x70] sm:$0xff] }
 0x47d   : > { %1485 = vperm.xlu0 %4024, %v1443_v25  }
 0x481   : > { %1495 = vperm.xlu0 %4024, %v1445_v26  }
 0x4d0   : > { %v2021_v28 = vpop.xlane.xlu0 %2020 }
 0x4d1   : > { %v2043_v29 = vmax.f32 %v2011_v27, %v2021_v28 }
 0x4d3   : > { %2640 = vst.msk [vmem:[#allocation3] sm:$0xff] %vm2187_vm3, %v2043_v29  ;;  %v2051_v5 = vsub.f32 %v2011_v27, %v2043_v29 }
 0x4d4   : > { %v2024_v31 = vpop.xlane.xlu0 %2023 }
 0x4d5   : > { %v2044_v32 = vmax.f32 %v2012_v30, %v2024_v31  ;;  %v2059_v17 = vmul.f32 1.442695, %v2051_v5 }
 0x4d7   : > { %2641 = vst.msk [vmem:[#allocation3 + $0x8] sm:$0xff] %vm2187_vm3, %v2044_v32  ;;  %2082 = vperm.xlu0 %4024, %v2044_v32   ;;  %v2052_v42 = vsub.f32 %v2012_v30, %v2044_v32 }
 0x4d8   : > { %v2030_v35 = vpop.xlane.xlu0 %2029  ;;  %v2027_v36 = vpop.xlane.xlu1 %2026 }
 0x4d9   : > { %v2046_v37 = vmax.f32 %v5066_v33, %v2030_v35  ;;  %v2045_v38 = vmax.f32 %v2013_v34, %v2027_v36  ;;  %v2061_v48 = vmul.f32 1.442695, %v2052_v42 }
 0x4db   : > { %2643 = vst.msk [vmem:[#allocation3 + $0x18] sm:$0xff] %vm2187_vm3, %v2046_v37  ;;  %2642 = vst.msk [vmem:[#allocation3 + $0x10] sm:$0xff] %vm2187_vm3, %v2045_v38  ;;  %2077 = vperm.xlu0 %4024, %v2043_v29   ;;  %2092 = vperm.xlu1 %4025, %v2046_v37   ;;  %4026 = vpow2.f32 %v2061_v48  ;;  %v2053_v20 = vsub.f32 %v2013_v34, %v2045_v38  ;;  %v2054_v28 = vsub.f32 %v5066_v33, %v2046_v37 }
 0x4dd   : > { %v2063_v29 = vmul.f32 1.442695, %v2053_v20  ;;  %v2065_v37 = vmul.f32 1.442695, %v2054_v28 }
 0x4df   : > { %1515 = vperm.xlu0 %4024, %v1449_v39   ;;  %v2036_v41 = vpop.xlane.xlu1 %2035  ;;  %2087 = vperm.xlu1 %4025, %v2045_v38   ;;  %v1452_v38 = vld [vmem:[%s5428_s11 + $0x78] sm:$0xff] }
 0x4e0   : > { %v5078_v43 = vmax.f32 %v5075_v40, %v2036_v41 }
 0x4e2   : > { %2645 = vst.msk [vmem:[#allocation3 + $0x28] sm:$0xff] %vm2187_vm3, %v5078_v43 }
 0x4e3   : > { %1505 = vperm.xlu0 %4024, %v1447_v44   ;;  %1520 = vperm.xlu1 %4025, %v1450_v45   ;;  %v2033_v47 = vpop.xlane.xlu1 %2032 }
 0x4e4   : > { %v2047_v61 = vmax.f32 %v2015_v46, %v2033_v47 }
 0x4e5   : > { %v5124_v34 = vpop.eup %4026 }
 0x4e6   : > { %v2055_v0 = vsub.f32 %v2015_v46, %v2047_v61  ;;  %2644 = vst.msk [vmem:[#allocation3 + $0x20] sm:$0xff] %vm2187_vm3, %v2047_v61 }
 0x4e7   : > { %2102 = vperm.xlu0 %4024, %v5078_v43   ;;  %1510 = vperm.xlu1 %4025, %v1448_v62   ;;  %v1456_v8 = vpop.permute.xlu1 %1455 }
 0x4e8   : > { %v2067_v11 = vmul.f32 1.442695, %v2055_v0  ;;  %v2039_v12 = vpop.xlane.xlu0 %2038  ;;  %v1600_v39 = vadd.f32 %v4967_v6, %v1456_v8 }
 0x4e9   : > { %v5096_v14 = vmax.f32 %v5092_v2, %v2039_v12 }
 0x4ea   : > { %4028 = vpow2.f32 %v2067_v11 }
 0x4eb   : > { %v2057_v18 = vsub.f32 %v5092_v2, %v5096_v14  ;;  %2646 = vst.msk [vmem:[#allocation3 + $0x30] sm:$0xff] %vm2187_vm3, %v5096_v14  ;;  %2097 = vperm.xlu0 %4024, %v2047_v61   ;;  %v1476_v19 = vpop.permute.xlu1 %1475  ;;  %4030 = vpow2.f32 %v2059_v17 }
 0x4ec   : > { %v2042_v21 = vpop.xlane.xlu0 %2041  ;;  %v1620_v30 = vadd.f32 %v4977_v24, %v1476_v19  ;;  %4032 = vpow2.f32 %v2063_v29 }
 0x4ed   : > { %v5108_v25 = vmax.f32 %v5098_v15, %v2042_v21  ;;  %4034 = vpow2.f32 %v2065_v37  ;;  %v2071_v32 = vmul.f32 1.442695, %v2057_v18 }
 0x4ef   : > { %v2058_v26 = vsub.f32 %v5098_v15, %v5108_v25  ;;  %2647 = vst.msk [vmem:[#allocation3 + $0x38] sm:$0xff] %vm2187_vm3, %v5108_v25  ;;  %2112 = vperm.xlu1 %4025, %v5108_v25   ;;  %1525 = vperm.xlu0 %4024, %v1451_v23   ;;  %v1481_v27 = vpop.permute.xlu1 %1480 }
 0x4f0   : > { %v1625_v31 = vadd.f32 %v4975_v22, %v1481_v27  ;;  %v2056_v22 = vsub.f32 %v5075_v40, %v5078_v43 }
 0x4f2   : > { %v3811_v35 = vpack.c.bf16 %v1625_v31, %v1620_v30  ;;  %v2069_v40 = vmul.f32 1.442695, %v2056_v22 }
 0x4f3   : > { %2107 = vperm.xlu1 %4025, %v5096_v14   ;;  %2583 = vperm.xlu0 %4024, %v5124_v34   ;;  %v1471_v36 = vpop.permute.xlu1 %1470 }
 0x4f4   : > { %v5128_v33 = vpop.eup %4028  ;;  %v1461_v24 = vpop.permute.xlu0 %1460  ;;  %3813 = vmatprep.subr.msk.bf16.mxu1 %vm5120_vm4, %v3811_v35  ;;  %v1615_v46 = vadd.f32 %v4969_v13, %v1471_v36  ;;  %4036 = vpow2.f32 %v2069_v40 }
 0x4f5   : > { %v1605_v41 = vadd.f32 %v4965_v4, %v1461_v24  ;;  %3816 = vmatpush3.bf16.xpose.msk.msra.mxu1 %vm5120_vm4, %v3811_v35  ;;  %v5142_v45 = vpop.eup %4030 }
 0x4f6   : > { %v5155_v13 = vpop.eup %4032 }
 0x4f7   : > { %v3799_v42 = vpack.c.bf16 %v1605_v41, %v1600_v39  ;;  %1530 = vperm.xlu1 %4025, %v1452_v38   ;;  %2598 = vperm.xlu0 %4024, %v5128_v33   ;;  %v1491_v43 = vpop.permute.xlu1 %1490 }
 0x4f8   : > { %v1466_v44 = vpop.permute.xlu0 %1465  ;;  %v1635_v48 = vadd.f32 %v4983_v49, %v1491_v43  ;;  %v5162_v49 = vpop.eup %4034 }
 0x4f9   : > { %v1610_v47 = vadd.f32 %v4972_v16, %v1466_v44  ;;  %3801 = vmatprep.subr.msk.bf16.mxu0 %vm5120_vm4, %v3799_v42 }
 0x4fa   : > { %3804 = vmatpush3.bf16.xpose.msk.msra.mxu0 %vm5120_vm4, %v3799_v42 }
 0x4fb   : > { %v3805_v4 = vpack.c.bf16 %v1615_v46, %v1610_v47  ;;  %2578 = vperm.xlu1 %4025, %v5142_v45   ;;  %v1501_v16 = vpop.permute.xlu1 %1500 }
 0x4fc   : > { %v1486_v6 = vpop.permute.xlu0 %1485  ;;  %v1645_v5 = vadd.f32 %v4987_v51, %v1501_v16 }
 0x4fd   : > { %v1630_v61 = vadd.f32 %v4985_v50, %v1486_v6  ;;  %3807 = vmatprep.subr.msk.bf16.mxu0 %vm5120_vm4, %v3805_v4 }
 0x4fe   : > { %v5171_v51 = vpop.eup %4036 }
 0x4ff   : > { %v3817_v62 = vpack.c.bf16 %v1635_v48, %v1630_v61  ;;  %2588 = vperm.xlu1 %4025, %v5155_v13  }
 0x500   : > { %v1496_v0 = vpop.permute.xlu0 %1495 }
 0x501   : > { %v1640_v8 = vadd.f32 %v4989_v52, %v1496_v0  ;;  %3819 = vmatprep.subr.msk.bf16.mxu1 %vm5120_vm4, %v3817_v62 }
 0x502   : > { %3810 = vmatpush3.bf16.xpose.msk.msra.mxu0 %vm5120_vm4, %v3805_v4  ;;  %3822 = vmatpush3.bf16.xpose.msk.msra.mxu1 %vm5120_vm4, %v3817_v62 }
 0x503   : > { %v3823_v50 = vpack.c.bf16 %v1645_v5, %v1640_v8  ;;  %2593 = vperm.xlu1 %4025, %v5162_v49  }
 0x505   : > { %3825 = vmatprep.subr.msk.bf16.mxu0 %vm5120_vm4, %v3823_v50 }
 0x507   : > { %2603 = vperm.xlu1 %4025, %v5171_v51  }
 0x556   : > { %v2083_v52 = vpop.permute.xlu0 %2082 }
 0x557   : > { %v2116_v11 = vsub.f32 %v5003_v59, %v2083_v52 }
 0x559   : > { %v2125_v12 = vmul.f32 1.442695, %v2116_v11 }
 0x55a   : > { %v2078_v17 = vpop.permute.xlu0 %2077  ;;  %v2093_v19 = vpop.permute.xlu1 %2092 }
 0x55b   : > { %4038 = vpow2.f32 %v2125_v12  ;;  %v2115_v20 = vsub.f32 %v5005_v60, %v2078_v17  ;;  %v2118_v21 = vsub.f32 %v5011_v63, %v2093_v19  ;;  %v2073_v19 = vmul.f32 1.442695, %v2058_v26 }
 0x55d   : > { %v2123_v23 = vmul.f32 1.442695, %v2115_v20  ;;  %v2129_v27 = vmul.f32 1.442695, %v2118_v21 }
 0x55e   : > { %v1516_v28 = vpop.permute.xlu0 %1515  ;;  %v2088_v29 = vpop.permute.xlu1 %2087 }
 0x55f   : > { %4040 = vpow2.f32 %v2123_v23  ;;  %v2117_v30 = vsub.f32 %v5015_v1, %v2088_v29  ;;  %v1660_v59 = vadd.f32 %v4997_v56, %v1516_v28 }
 0x560   : > { %4042 = vpow2.f32 %v2129_v27 }
 0x561   : > { %v2127_v31 = vmul.f32 1.442695, %v2117_v30 }
 0x562   : > { %v1506_v35 = vpop.permute.xlu0 %1505  ;;  %v1521_v36 = vpop.permute.xlu1 %1520 }
 0x563   : > { %4044 = vpow2.f32 %v2127_v31  ;;  %v1665_v37 = vadd.f32 %v4995_v55, %v1521_v36  ;;  %v1650_v39 = vadd.f32 %v4993_v54, %v1506_v35  ;;  %v2140_v31 = vld [vmem:[#allocation4 + $0x8] sm:$0xff]  ;;  %v2139_v35 = vld [vmem:[#allocation4] sm:$0xff]  ;;  %v2142_v36 = vld [vmem:[#allocation4 + $0x18] sm:$0xff] }
 0x564   : > { %v2148_v15 = vmul.f32 %v5124_v34, %v2140_v31  ;;  %v2147_v14 = vmul.f32 %v5142_v45, %v2139_v35 }
 0x565   : > { %v4039_v22 = vpop.eup %4038  ;;  %v3835_v60 = vpack.c.bf16 %v1665_v37, %v1660_v59  ;;  %v2150_v37 = vmul.f32 %v5162_v49, %v2142_v36  ;;  %v2724_v36 = vld [vmem:[#allocation16] sm:$0xff] (!%p3375_p7) }
 0x566   : > { %v2103_v24 = vpop.permute.xlu0 %2102  ;;  %v1511_v63 = vpop.permute.xlu1 %1510  ;;  %v2158_v38 = vsel %vm1686_vm2, %v4039_v22, 0.0 }
 0x567   : > { %v2120_v41 = vsub.f32 %v5019_v3, %v2103_v24  ;;  %v1655_v1 = vadd.f32 %v4991_v53, %v1511_v63  ;;  %2159 = vadd.xlane.f32.xlu1 %v2158_v38  ;;  %3837 = vmatprep.subr.msk.bf16.mxu1 %vm5120_vm4, %v3835_v60  ;;  %v2144_v38 = vld [vmem:[#allocation4 + $0x28] sm:$0xff] }
 0x568   : > { %v2152_v45 = vmul.f32 %v5171_v51, %v2144_v38  ;;  %v2727_v38 = vld [vmem:[#allocation16 + $0x18] sm:$0xff] (!%p3375_p7) }
 0x569   : > { %v4041_v56 = vpop.eup %4040  ;;  %v2133_v42 = vmul.f32 1.442695, %v2120_v41  ;;  %v3829_v40 = vpack.c.bf16 %v1655_v1, %v1650_v39  ;;  %v2143_v1 = vld [vmem:[#allocation4 + $0x20] sm:$0xff] }
 0x56a   : > { %3667 = vmatprep.mubr.msk.f32.mxu0 %vm1686_vm2, %v4041_v56  ;;  %v2098_v55 = vpop.permute.xlu0 %2097  ;;  %v2155_v43 = vsel %vm1686_vm2, %v4041_v56, 0.0  ;;  %v4043_v44 = vpop.eup %4042  ;;  %v2151_v49 = vmul.f32 %v5128_v33, %v2143_v1 }
 0x56b   : > { %4046 = vpow2.f32 %v2133_v42  ;;  %v2119_v54 = vsub.f32 %v5023_v7, %v2098_v55  ;;  %2156 = vadd.xlane.f32.xlu0 %v2155_v43  ;;  %3668 = vmatmul.mubr.msk.f32.vlgmr.msra.gmra.mrb[20].mxu0 %vm1686_vm2, %v4039_v22  ;;  %v2164_v47 = vsel %vm1686_vm2, %v4043_v44, 0.0 }
 0x56c   : > { %3828 = vmatpush3.bf16.xpose.msk.msra.mxu0 %vm5120_vm4, %v3823_v50 }
 0x56d   : > { %v4045_v53 = vpop.eup %4044  ;;  %v2131_v3 = vmul.f32 1.442695, %v2119_v54  ;;  %3831 = vmatprep.subr.msk.bf16.mxu0 %vm5120_vm4, %v3829_v40 }
 0x56e   : > { %3678 = vmatprep.mubr.msk.f32.mxu1 %vm1686_vm2, %v4045_v53  ;;  %v2113_v46 = vpop.permute.xlu1 %2112  ;;  %v2161_v48 = vsel %vm1686_vm2, %v4045_v53, 0.0  ;;  %v1526_v16 = vpop.permute.xlu0 %1525 }
 0x56f   : > { %4048 = vpow2.f32 %v2131_v3  ;;  %v2122_v4 = vsub.f32 %v5027_v9, %v2113_v46  ;;  %2165 = vadd.xlane.f32.xlu0 %v2164_v47  ;;  %3679 = vmatmul.mubr.msk.f32.vlgmr.msra.gmra.mrb[20].mxu1 %vm1686_vm2, %v4043_v44  ;;  %v1670_v8 = vadd.f32 %v5001_v58, %v1526_v16  ;;  %v2145_v44 = vld [vmem:[#allocation4 + $0x30] sm:$0xff]  ;;  %v2569_v46 = vld [vmem:[#allocation5 + $0x8] sm:$0xff]  ;;  %v2568_v47 = vld [vmem:[#allocation5] sm:$0xff] }
 0x570   : > { %3840 = vmatpush3.bf16.xpose.msk.msra.mxu1 %vm5120_vm4, %v3835_v60  ;;  %v2141_v60 = vld [vmem:[#allocation4 + $0x10] sm:$0xff] }
 0x571   : > { %v2137_v7 = vmul.f32 1.442695, %v2122_v4  ;;  %v2149_v34 = vmul.f32 %v5155_v13, %v2141_v60 }
 0x572   : > { %v2108_v6 = vpop.permute.xlu1 %2107  ;;  %v2584_v29 = vpop.permute.xlu0 %2583 }
 0x573   : > { %4050 = vpow2.f32 %v2137_v7  ;;  %v2121_v61 = vsub.f32 %v5029_v10, %v2108_v6  ;;  %2162 = vadd.xlane.f32.xlu0 %v2161_v48  ;;  %v2617_v4 = vmul.f32 %v2584_v29, %v2569_v46  ;;  %v2571_v7 = vld [vmem:[#allocation5 + $0x18] sm:$0xff]  ;;  %v2570_v48 = vld [vmem:[#allocation5 + $0x10] sm:$0xff]  ;;  %v2737_v46 = vld [vmem:[#allocation16 + $0x68] sm:$0xff] (!%p3375_p7) }
 0x574   : > { %3834 = vmatpush3.bf16.xpose.msk.msra.mxu0 %vm5120_vm4, %v3829_v40  ;;  %v2146_v40 = vld [vmem:[#allocation4 + $0x38] sm:$0xff] }
 0x575   : > { %v4047_v62 = vpop.eup %4046  ;;  %v2135_v9 = vmul.f32 1.442695, %v2121_v61 }
 0x576   : > { %v1531_v0 = vpop.permute.xlu1 %1530  ;;  %v2170_v5 = vsel %vm1686_vm2, %v4047_v62, 0.0  ;;  %v2599_v25 = vpop.permute.xlu0 %2598 }
 0x577   : > { %4052 = vpow2.f32 %v2135_v9  ;;  %v1675_v50 = vadd.f32 %v4999_v57, %v1531_v0  ;;  %2171 = vadd.xlane.f32.xlu0 %v2170_v5 }
 0x578   : > { %4054 = vpow2.f32 %v2073_v19 }
 0x579   : > { %v4049_v52 = vpop.eup %4048  ;;  %v3841_v11 = vpack.c.bf16 %v1675_v50, %v1670_v8  ;;  %4056 = vpow2.f32 %v2071_v32 }
 0x57a   : > { %3689 = vmatprep.mubr.msk.f32.mxu0 %vm1686_vm2, %v4049_v52  ;;  %v2167_v10 = vsel %vm1686_vm2, %v4049_v52, 0.0  ;;  %v2579_v23 = vpop.permute.xlu1 %2578 }
 0x57b   : > { %2168 = vadd.xlane.f32.xlu1 %v2167_v10  ;;  %3690 = vmatmul.mubr.msk.f32.vlgmr.msra.gmra.mrb[22].mxu0 %vm1686_vm2, %v4047_v62  ;;  %v2616_v33 = vmul.f32 %v2579_v23, %v2568_v47  ;;  %v2572_v10 = vld [vmem:[#allocation5 + $0x20] sm:$0xff]  ;;  %v2574_v23 = vld [vmem:[#allocation5 + $0x30] sm:$0xff] }
 0x57c   : > { %3843 = vmatprep.subr.msk.bf16.mxu1 %vm5120_vm4, %v3841_v11 }
 0x57d   : > { %v4051_v12 = vpop.eup %4050  ;;  %3846 = vmatpush3.bf16.xpose.msk.msra.mxu1 %vm5120_vm4, %v3841_v11  ;;  %v2573_v11 = vld [vmem:[#allocation5 + $0x28] sm:$0xff] }
 0x57e   : > { %v2176_v58 = vsel %vm1686_vm2, %v4051_v12, 0.0  ;;  %v2589_v27 = vpop.permute.xlu1 %2588 }
 0x57f   : > { %2177 = vadd.xlane.f32.xlu0 %v2176_v58  ;;  %v2618_v0 = vmul.f32 %v2589_v27, %v2570_v48  ;;  %v2620_v58 = vmul.f32 %v2599_v25, %v2572_v10  ;;  %v2738_v10 = vld [vmem:[#allocation16 + $0x70] sm:$0xff] (!%p3375_p7) }
 0x581   : > { %v4053_v57 = vpop.eup %4052 }
 0x582   : > { %3700 = vmatprep.mubr.msk.f32.mxu1 %vm1686_vm2, %v4053_v57  ;;  %v2173_v17 = vsel %vm1686_vm2, %v4053_v57, 0.0  ;;  %v4055_v20 = vpop.eup %4054  ;;  %v2594_v28 = vpop.permute.xlu1 %2593 }
 0x583   : > { %2174 = vadd.xlane.f32.xlu1 %v2173_v17  ;;  %v4057_v21 = vpop.eup %4056  ;;  %v2154_v13 = vmul.f32 %v4055_v20, %v2146_v40  ;;  %v2619_v9 = vmul.f32 %v2594_v28, %v2571_v7  ;;  %v2734_v40 = vld [vmem:[#allocation16 + $0x50] sm:$0xff] (!%p3375_p7) }
 0x584   : > { %3701 = vmatmul.mubr.msk.f32.vlgmr.msra.gmra.mrb[22].mxu1 %vm1686_vm2, %v4051_v12  ;;  %v2153_v53 = vmul.f32 %v4057_v21, %v2145_v44  ;;  %v2728_v44 = vld [vmem:[#allocation16 + $0x20] sm:$0xff] (!%p3375_p7) }
 0x586   : > { %v5224_v30 = vpop.permute.xlu1 %2603 }
 0x587   : > { %v2621_v12 = vmul.f32 %v5224_v30, %v2573_v11 }
 0x594   : > { %2613 = vperm.xlu1 %4025, %v4055_v20   ;;  %v2575_v20 = vld [vmem:[#allocation5 + $0x38] sm:$0xff] }
 0x595   : > { %2608 = vperm.xlu0 %4024, %v4057_v21  }
 0x5f4   : > { %v2160_v26 = vpop.xlane.xlu1 %2159 }
 0x5f5   : > { %v2180_v2 = vadd.f32 %v2160_v26, %v2148_v15 }
 0x5f7   : > { %2189 = vst.msk [vmem:[#allocation4 + $0x8] sm:$0xff] %vm2187_vm3, %v2180_v2 }
 0x5f8   : > { %v2157_v18 = vpop.xlane.xlu0 %2156 }
 0x5f9   : > { %v2179_v59 = vadd.f32 %v2157_v18, %v2147_v14  ;;  %v4362_v14 = vmov (!%p3375_p7), 0  }
 0x5fa   : > { %4059 = vset.pattern.permute.xlu1 (!%p3375_p7), %v4362_v14  ;;  %4058 = vset.pattern.permute.xlu0 (!%p3375_p7), %v4362_v14 }
 0x5fb   : > { %2188 = vst.msk [vmem:[#allocation4] sm:$0xff] %vm2187_vm3, %v2179_v59  ;;  %v2725_v59 = vld [vmem:[#allocation16 + $0x8] sm:$0xff] (!%p3375_p7) }
 0x5fc   : > { %v2166_v22 = vpop.xlane.xlu0 %2165 }
 0x5fd   : > { %v2182_v24 = vadd.f32 %v2166_v22, %v2150_v37  ;;  %v2732_v37 = vld [vmem:[#allocation16 + $0x40] sm:$0xff] (!%p3375_p7)  ;;  %v2733_v22 = vld [vmem:[#allocation16 + $0x48] sm:$0xff] (!%p3375_p7) }
 0x5fe   : > { %v2653_v30 = vld [vmem:[#allocation4 + $0x8] sm:$0xff] (!%p3375_p7) }
 0x5ff   : > { %2191 = vst.msk [vmem:[#allocation4 + $0x18] sm:$0xff] %vm2187_vm3, %v2182_v24  ;;  %4060 = vrcp.f32 (!%p3375_p7), %v2653_v30  ;;  %v3847_v24 = vpack.c.bf16 (!%p3375_p7), %v2725_v59, %v2724_v36 }
 0x600   : > { %v2163_v63 = vpop.xlane.xlu0 %2162 }
 0x601   : > { %v2181_v39 = vadd.f32 %v2163_v63, %v2149_v34  ;;  %v3863_v34 = vpack.c.bf16 (!%p3375_p7), %v2733_v22, %v2732_v37  ;;  %v2726_v63 = vld [vmem:[#allocation16 + $0x10] sm:$0xff] (!%p3375_p7)  ;;  %3848 = vmatprep.subr.bf16.mxu1 (!%p3375_p7), %v3847_v24  ;;  %v3080_v22 = vld [vmem:[%s4750_s19 + $0x8] sm:$0xff] (!%p3375_p7) }
 0x602   : > { %v2652_v25 = vld [vmem:[#allocation4] sm:$0xff] (!%p3375_p7)  ;;  %3850 = vmatpush3.bf16.msra.mxu1 (!%p3375_p7), %v3847_v24 }
 0x603   : > { %2190 = vst.msk [vmem:[#allocation4 + $0x10] sm:$0xff] %vm2187_vm3, %v2181_v39  ;;  %4062 = vrcp.f32 (!%p3375_p7), %v2652_v25  ;;  %3864 = vmatprep.subr.bf16.mxu0 (!%p3375_p7), %v3863_v34  ;;  %v3079_v24 = vld [vmem:[%s4750_s19] sm:$0xff] (!%p3375_p7) }
 0x604   : > { %v2172_v41 = vpop.xlane.xlu0 %2171  ;;  %3866 = vmatpush3.bf16.msra.mxu0 (!%p3375_p7), %v3863_v34 }
 0x605   : > { %v2184_v56 = vadd.f32 %v2172_v41, %v2152_v45  ;;  %v3851_v45 = vpack.c.bf16 (!%p3375_p7), %v2727_v38, %v2726_v63 }
 0x606   : > { %v2655_v1 = vld [vmem:[#allocation4 + $0x18] sm:$0xff] (!%p3375_p7) }
 0x607   : > { %2193 = vst.msk [vmem:[#allocation4 + $0x28] sm:$0xff] %vm2187_vm3, %v2184_v56  ;;  %3852 = vmatprep.subr.bf16.mxu1 (!%p3375_p7), %v3851_v45 }
 0x608   : > { %v2169_v42 = vpop.xlane.xlu1 %2168  ;;  %3854 = vmatpush3.bf16.msra.mxu1 (!%p3375_p7), %v3851_v45 }
 0x609   : > { %v2183_v55 = vadd.f32 %v2169_v42, %v2151_v49  ;;  %v4061_v56 = vpop.eup (!%p3375_p7), %4060 }
 0x60a   : > { %v2654_v39 = vld [vmem:[#allocation4 + $0x10] sm:$0xff] (!%p3375_p7)  ;;  %2683 = vperm.xlu1 (!%p3375_p7), %4059, %v4061_v56  }
 0x60b   : > { %2192 = vst.msk [vmem:[#allocation4 + $0x20] sm:$0xff] %vm2187_vm3, %v2183_v55  ;;  %v2735_v55 = vld [vmem:[#allocation16 + $0x58] sm:$0xff] (!%p3375_p7) }
 0x60c   : > { %v2178_v43 = vpop.xlane.xlu0 %2177 }
 0x60d   : > { %v2186_v54 = vadd.f32 %v2178_v43, %v2154_v13  ;;  %v4063_v49 = vpop.eup (!%p3375_p7), %4062  ;;  %v3867_v43 = vpack.c.bf16 (!%p3375_p7), %v2735_v55, %v2734_v40 }
 0x60e   : > { %v2657_v2 = vld [vmem:[#allocation4 + $0x28] sm:$0xff] (!%p3375_p7)  ;;  %2678 = vperm.xlu0 (!%p3375_p7), %4058, %v4063_v49  }
 0x60f   : > { %2195 = vst.msk [vmem:[#allocation4 + $0x38] sm:$0xff] %vm2187_vm3, %v2186_v54  ;;  %4064 = vrcp.f32 (!%p3375_p7), %v2657_v2  ;;  %3868 = vmatprep.subr.bf16.mxu0 (!%p3375_p7), %v3867_v43  ;;  %v2729_v54 = vld [vmem:[#allocation16 + $0x28] sm:$0xff] (!%p3375_p7) }
 0x610   : > { %v2175_v51 = vpop.xlane.xlu1 %2174  ;;  %3870 = vmatpush3.bf16.msra.mxu0 (!%p3375_p7), %v3867_v43 }
 0x611   : > { %v2185_v3 = vadd.f32 %v2175_v51, %v2153_v53  ;;  %v3855_v51 = vpack.c.bf16 (!%p3375_p7), %v2729_v54, %v2728_v44 }
 0x612   : > { %v2656_v18 = vld [vmem:[#allocation4 + $0x20] sm:$0xff] (!%p3375_p7) }
 0x613   : > { %2194 = vst.msk [vmem:[#allocation4 + $0x30] sm:$0xff] %vm2187_vm3, %v2185_v3  ;;  %4066 = vrcp.f32 (!%p3375_p7), %v2656_v18  ;;  %v2736_v3 = vld [vmem:[#allocation16 + $0x60] sm:$0xff] (!%p3375_p7)  ;;  %3856 = vmatprep.subr.bf16.mxu1 (!%p3375_p7), %v3855_v51 }
 0x614   : > { %v2614_v21 = vpop.permute.xlu1 %2613  ;;  %v2609_v27 = vpop.permute.xlu0 %2608  ;;  %v3384_v18 = vld [vmem:[%s5432_s24] ss:$0 sm:$0xff] (!%p3375_p7) }
 0x615   : > { %v2623_v28 = vmul.f32 %v2614_v21, %v2575_v20  ;;  %v2622_v29 = vmul.f32 %v2609_v27, %v2574_v23 }
 0x616   : > { %v2659_v41 = vld [vmem:[#allocation4 + $0x38] sm:$0xff] (!%p3375_p7) }
 0x619   : > { %v4065_v42 = vpop.eup (!%p3375_p7), %4064 }
 0x61a   : > { %v2658_v60 = vld [vmem:[#allocation4 + $0x30] sm:$0xff] (!%p3375_p7)  ;;  %2703 = vperm.xlu1 (!%p3375_p7), %4059, %v4065_v42  }
 0x61b   : > { %4068 = vrcp.f32 (!%p3375_p7), %v2658_v60 }
 0x61c   : > { %4070 = vrcp.f32 (!%p3375_p7), %v2654_v39 }
 0x61d   : > { %4072 = vrcp.f32 (!%p3375_p7), %v2659_v41  ;;  %v4067_v13 = vpop.eup (!%p3375_p7), %4066 }
 0x61e   : > { %4074 = vrcp.f32 (!%p3375_p7), %v2655_v1  ;;  %2698 = vperm.xlu0 (!%p3375_p7), %4058, %v4067_v13  }
 0x625   : > { %v4069_v53 = vpop.eup (!%p3375_p7), %4068 }
 0x626   : > { %v4071_v47 = vpop.eup (!%p3375_p7), %4070  ;;  %2708 = vperm.xlu1 (!%p3375_p7), %4059, %v4069_v53  }
 0x627   : > { %2688 = vperm.xlu0 (!%p3375_p7), %4058, %v4071_v47   ;;  %v3386_v47 = vld [vmem:[%s5434_s27] ss:$0 sm:$0xff] (!%p3375_p7) }
 0x63e   : > { %v3669_v6 = vpop.f32.mrb[20].mxu0 }
 0x63f   : > { %v2625_v61 = vadd.f32 %v3669_v6, %v2617_v4  ;;  %v2280_v16 = vpop.f32.mrb[21].mxu0  ;;  %v3871_v4 = vpack.c.bf16 (!%p3375_p7), %v2737_v46, %v2736_v3  ;;  %v3385_v3 = vld [vmem:[%s5433_s9] ss:$0 sm:$0xff] (!%p3375_p7) }
 0x640   : > { %v2624_v62 = vadd.f32 %v2616_v33, %v2280_v16  ;;  %v4073_v33 = vpop.eup (!%p3375_p7), %4072  ;;  %v2730_v16 = vld [vmem:[#allocation16 + $0x30] sm:$0xff] (!%p3375_p7) }
 0x641   : > { %2633 = vst.msk [vmem:[#allocation5 + $0x8] sm:$0xff] %vm1686_vm2, %v2625_v61  ;;  %3872 = vmatprep.subr.bf16.mxu0 (!%p3375_p7), %v3871_v4  ;;  %v4075_v7 = vpop.eup (!%p3375_p7), %4074  ;;  %2713 = vperm.xlu1 (!%p3375_p7), %4059, %v4073_v33  }
 0x642   : > { %2632 = vst.msk [vmem:[#allocation5] sm:$0xff] %vm1686_vm2, %v2624_v62  ;;  %v3680_v5 = vpop.f32.mrb[20].mxu1  ;;  %2693 = vperm.xlu0 (!%p3375_p7), %4058, %v4075_v7   ;;  %v2731_v62 = vld [vmem:[#allocation16 + $0x38] sm:$0xff] (!%p3375_p7) }
 0x643   : > { %v2627_v8 = vadd.f32 %v3680_v5, %v2619_v9  ;;  %v2373_v50 = vpop.f32.mrb[21].mxu1 }
 0x644   : > { %v2626_v52 = vadd.f32 %v2618_v0, %v2373_v50 }
 0x645   : > { %2635 = vst.msk [vmem:[#allocation5 + $0x18] sm:$0xff] %vm1686_vm2, %v2627_v8 }
 0x646   : > { %2634 = vst.msk [vmem:[#allocation5 + $0x10] sm:$0xff] %vm1686_vm2, %v2626_v52  ;;  %v3859_v52 = vpack.c.bf16 (!%p3375_p7), %v2731_v62, %v2730_v16 }
 0x648   : > { %v2669_v6 = vld [vmem:[#allocation5 + $0x8] sm:$0xff] (!%p3375_p7) }
 0x649   : > { %v2668_v48 = vld [vmem:[#allocation5] sm:$0xff] (!%p3375_p7) }
 0x64e   : > { %v3691_v57 = vpop.f32.mrb[22].mxu0 }
 0x64f   : > { %v2629_v17 = vadd.f32 %v3691_v57, %v2621_v12  ;;  %v2466_v19 = vpop.f32.mrb[23].mxu0  ;;  %v2739_v12 = vld [vmem:[#allocation16 + $0x78] sm:$0xff] (!%p3375_p7) }
 0x650   : > { %v2628_v32 = vadd.f32 %v2620_v58, %v2466_v19  ;;  %v3875_v20 = vpack.c.bf16 (!%p3375_p7), %v2739_v12, %v2738_v10 }
 0x651   : > { %2637 = vst.msk [vmem:[#allocation5 + $0x28] sm:$0xff] %vm1686_vm2, %v2629_v17 }
 0x652   : > { %2636 = vst.msk [vmem:[#allocation5 + $0x20] sm:$0xff] %vm1686_vm2, %v2628_v32  ;;  %v2670_v32 = vld [vmem:[#allocation5 + $0x10] sm:$0xff] (!%p3375_p7) }
 0x655   : > { %2651 = sbr.rel (%p3375_p7) target bundleno = 2267 (0x8db), region = 180 }
 0x657   : > { %v3702_v31 = vpop.f32.mrb[22].mxu1 }
 0x658   : > { %v2631_v15 = vadd.f32 %v3702_v31, %v2623_v28  ;;  %v2559_v26 = vpop.f32.mrb[23].mxu1  ;;  %v2673_v8 = vld [vmem:[#allocation5 + $0x28] sm:$0xff] (!%p3375_p7)  ;;  %v2671_v31 = vld [vmem:[#allocation5 + $0x18] sm:$0xff] (!%p3375_p7) }
 0x659   : > { %v2630_v35 = vadd.f32 %v2622_v29, %v2559_v26  ;;  %v2672_v50 = vld [vmem:[#allocation5 + $0x20] sm:$0xff] (!%p3375_p7) }
 0x65a   : > { %2639 = vst.msk [vmem:[#allocation5 + $0x38] sm:$0xff] %vm1686_vm2, %v2631_v15 }
 0x65b   : > { %2638 = vst.msk [vmem:[#allocation5 + $0x30] sm:$0xff] %vm1686_vm2, %v2630_v35 }
 0x661   : > { %v2675_v29 = vld [vmem:[#allocation5 + $0x38] sm:$0xff] }
 0x662   : > { %v2674_v19 = vld [vmem:[#allocation5 + $0x30] sm:$0xff] }
 0x689   : > { %v2684_v61 = vpop.permute.xlu1 %2683 }
 0x68a   : > { %v2717_v9 = vmul.f32 %v2684_v61, %v2669_v6 }
 0x68d   : > { %v2679_v0 = vpop.permute.xlu0 %2678 }
 0x68e   : > { %v2716_v5 = vmul.f32 %v2679_v0, %v2668_v48 }
 0x690   : > { %3711 = vmatprep.mubr.msk.f32.mxu1 %vm1686_vm2, %v2716_v5 }
 0x691   : > { %3712 = vmatmul.mubr.msk.f32.vlgmr.msra.gmra.mrb[0].mxu1 %vm1686_vm2, %v2717_v9 }
 0x692   : > { %3858 = vmatpush3.bf16.msra.mxu1 %v3855_v51 }
 0x693   : > { %3860 = vmatprep.subr.bf16.mxu1 %v3859_v52 }
 0x696   : > { %3862 = vmatpush3.bf16.msra.mxu1 %v3859_v52 }
 0x699   : > { %v2704_v11 = vpop.permute.xlu1 %2703 }
 0x69a   : > { %v2721_v58 = vmul.f32 %v2704_v11, %v2673_v8 }
 0x69d   : > { %v2699_v57 = vpop.permute.xlu0 %2698 }
 0x69e   : > { %v2720_v17 = vmul.f32 %v2699_v57, %v2672_v50 }
 0x6a0   : > { %3733 = vmatprep.mubr.msk.f32.mxu0 %vm1686_vm2, %v2720_v17 }
 0x6a1   : > { %3734 = vmatmul.mubr.msk.f32.vlgmr.msra.gmra.mrb[0].mxu0 %vm1686_vm2, %v2721_v58 }
 0x6a2   : > { %3874 = vmatpush3.bf16.msra.mxu0 %v3871_v4 }
 0x6a3   : > { %3876 = vmatprep.subr.bf16.mxu0 %v3875_v20 }
 0x6a5   : > { %v2709_v21 = vpop.permute.xlu1 %2708 }
 0x6a6   : > { %v2722_v23 = vmul.f32 %v2709_v21, %v2674_v19  ;;  %v2689_v27 = vpop.permute.xlu0 %2688  ;;  %3878 = vmatpush3.bf16.msra.mxu0 %v3875_v20 }
 0x6a7   : > { %v2718_v28 = vmul.f32 %v2689_v27, %v2670_v32 }
 0x6a8   : > { %3744 = vmatprep.mubr.msk.f32.mxu0 %vm1686_vm2, %v2722_v23 }
 0x6a9   : > { %3722 = vmatprep.mubr.msk.f32.mxu1 %vm1686_vm2, %v2718_v28 }
 0x6c0   : > { %v2714_v15 = vpop.permute.xlu1 %2713 }
 0x6c1   : > { %v2723_v26 = vmul.f32 %v2714_v15, %v2675_v29  ;;  %v2694_v35 = vpop.permute.xlu0 %2693 }
 0x6c2   : > { %v2719_v30 = vmul.f32 %v2694_v35, %v2671_v31 }
 0x6c3   : > { %3745 = vmatmul.mubr.msk.f32.vlgmr.msra.gmra.mrb[0].mxu0 %vm1686_vm2, %v2723_v26 }
 0x6c4   : > { %3723 = vmatmul.mubr.msk.f32.vlgmr.msra.gmra.mrb[0].mxu1 %vm1686_vm2, %v2719_v30 }
 0x796   : > { %v3746_v14 = vpop.f32.mrb[0].mxu0 }
 0x797   : > { %v3724_v25 = vpop.f32.mrb[0].mxu1  ;;  %v3055_v59 = vpop.f32.mrb[1].mxu0 }
 0x798   : > { %v2893_v2 = vpop.f32.mrb[1].mxu1  ;;  %v3881_v36 = vadd.f32 %v3746_v14, %v3724_v25 }
 0x799   : > { %v3882_v37 = vadd.f32 %v3055_v59, %v2893_v2 }
 0x79a   : > { %v3078_v60 = vadd.f32 %v3881_v36, %v3384_v18 }
 0x79b   : > { %v3077_v34 = vadd.f32 %v3882_v37, %v3384_v18 }
 0x79c   : > { %v3082_v63 = vadd.f32 %v3080_v22, %v3078_v60 }
 0x79d   : > { %v3081_v38 = vadd.f32 %v3079_v24, %v3077_v34 }
 0x79e   : > { %3085 = vadd.xlane.f32.xlu1 %v3082_v63 }
 0x79f   : > { %3083 = vadd.xlane.f32.xlu0 %v3081_v38 }
 0x82b   : > { %v3086_v39 = vpop.xlane.xlu1 %3085 }
 0x82c   : > { %v3084_v45 = vpop.xlane.xlu0 %3083  ;;  %v3089_v41 = vmul.f32 0.0078125, %v3086_v39 }
 0x82d   : > { %v3088_v1 = vmul.f32 0.0078125, %v3084_v45 }
 0x82e   : > { %v3091_v49 = vsub.f32 %v3082_v63, %v3089_v41 }
 0x82f   : > { %v3090_v56 = vsub.f32 %v3081_v38, %v3088_v1 }
 0x830   : > { %v3093_v40 = vmul.f32 %v3091_v49, %v3091_v49 }
 0x831   : > { %v3092_v42 = vmul.f32 %v3090_v56, %v3090_v56 }
 0x833   : > { %3094 = vadd.xlane.f32.xlu0 %v3092_v42 }
 0x837   : > { %3096 = vadd.xlane.f32.xlu0 %v3093_v40 }
 0x8c0   : > { %v3095_v55 = vpop.xlane.xlu0 %3094 }
 0x8c1   : > { %v3098_v13 = vmul.f32 0.0078125, %v3095_v55 }
 0x8c3   : > { %v3100_v43 = vadd.f32 1e-05, %v3098_v13 }
 0x8c4   : > { %v3097_v44 = vpop.xlane.xlu0 %3096 }
 0x8c5   : > { %4076 = vrsqrt.f32 %v3100_v43  ;;  %v3099_v54 = vmul.f32 0.0078125, %v3097_v44 }
 0x8c7   : > { %v3101_v53 = vadd.f32 1e-05, %v3099_v54 }
 0x8c9   : > { %4078 = vrsqrt.f32 %v3101_v53 }
 0x8cf   : > { %v4077_v51 = vpop.eup %4076 }
 0x8d0   : > { %v3104_v46 = vmul.f32 %v4077_v51, %v3090_v56 }
 0x8d2   : > { %v3113_v4 = vmul.f32 %v3385_v3, %v3104_v46 }
 0x8d3   : > { %v4079_v33 = vpop.eup %4078 }
 0x8d4   : > { %v3122_v7 = vadd.f32 %v3386_v47, %v3113_v4  ;;  %v3105_v6 = vmul.f32 %v4079_v33, %v3091_v49 }
 0x8d6   : > { %3124 = vst [vmem:[%s4774_s3] sm:$0xff] %v3122_v7  ;;  %v3114_v48 = vmul.f32 %v3385_v3, %v3105_v6 }
 0x8d8   : > { %v3123_v61 = vadd.f32 %v3386_v47, %v3114_v48 }
 0x8da   : > { %3125 = vst [vmem:[%s4774_s3 + $0x8] sm:$0xff] %v3123_v61 }
 0x8db PF: > { %s5435_s29 = sld [smem:[#allocation27_spill]]  ;;  %s5436_s15 = sld [smem:[#allocation34_spill]] }
 0x8dc   : > { %s5437_s12 = sld [smem:[#allocation45_spill]]  ;;  %s3139_s24 = sshll.u32 %s4774_s3, 4  ;;  %s5278_s24 = int_to_ptr.vmem [resolvable:$true] %s3139_s24 }
 0x8dd   : > { %s3127_s19 = scalar_lea.sflag [#allocation8], %s4746_s14  ;;  %s4220_s18 = scalar_lea.vmem %s5278_s24, 256 }
 0x8de   : > { %p4221_p13 = scmp.ne.s32.totalorder %s5278_s24, %s4220_s18  ;;  %s4363_s9 = smov [#allocation17]  }
 0x8df   : > { %s4224_s7 = sshll.u32 %s4363_s9, 4  ;;  %s4225_s7 = int_to_ptr.vmem [resolvable:$false] %s4224_s7 }
 0x8e0   : > { %s4226_s13 = scalar_lea.vmem %s4225_s7, 512  ;;  %p4227_p4 = scmp.lt.s32.totalorder %s5278_s24, %s4225_s7 }
 0x8e1   : > { %s3388_s4 = sshll.u32 %s5435_s29, 7  ;;  %p5438_p12 = scmp.ne.s32.totalorder %s5436_s15, 0 }
 0x8e2   : > { %s5275_s26 = scalar_lea.hbm %s5437_s12, %s3388_s4  ;;  %p4228_p6 = scmp.lt.s32.totalorder %s4226_s13, %s4220_s18 }
 0x8e3   : > { %p4222_p2 = pnand %p4221_p13, %p5438_p12 }
 0x8e4   : > { %p4229_p11 = por %p4228_p6, %p4227_p4 }
 0x8e5   : > { %p4223_p10 = pneg %p4222_p2 }
 0x8e7   : > { %p4230_p0 = pnand %p4229_p11, %p4223_p10 }
 0x8e9   : > { %4233 = shalt.err (!%p4230_p0)
}
 0x8ea   : > { %s4234_s3 = scalar_lea.hbm %s5275_s26, 256  ;;  %s4238_s4 = scalar_lea.hbm %s5437_s12, 512 }
 0x8eb   : > { %p4235_p5 = scmp.ne.s32.totalorder %s5275_s26, %s4234_s3  ;;  %p4239_p3 = scmp.lt.u32.totalorder %s5275_s26, %s5437_s12 }
 0x8ec   : > { %p4240_p9 = scmp.lt.u32.totalorder %s4238_s4, %s4234_s3  ;;  %p4242_p13 = scmp.lt.u32.totalorder %s4234_s3, %s5275_s26 }
 0x8ed   : > { %p4236_p8 = pnand %p4235_p5, %p5438_p12 }
 0x8ee   : > { %p4241_p7 = por %p4240_p9, %p4239_p3 }
 0x8ef   : > { %p4237_p1 = pneg %p4236_p8 }
 0x8f0   : > { %p4243_p2 = por %p4242_p13, %p4241_p7 }
 0x8f2   : > { %p4244_p10 = pnand %p4243_p2, %p4237_p1 }
 0x8f4   : > { %4247 = shalt.err (!%p4244_p10)
}
 0x8f5   : > { %s4364_s18 = smov 128   ;;  %s4365_s9 = smov 256  }
 0x8f6   : > { %s4366_s7 = smov 8  }
 0x8f7   : > { %3903 = dma.vmem_to_hbm [thread:$0]  (%p5438_p12), %s5278_s24, 256, %s5275_s26, %s3127_s19, %s4364_s18, %s4365_s9, %s4366_s7  }
 0x8f8 PF: > { %s5439_s13 = sld [smem:[#allocation24_spill]]  ;;  %s5440_s27 = sld [smem:[#allocation35_spill]] }
 0x8f9   : > { %p3925_p4 = scmp.ge.s32.totalorder %s4346_s22, 2 }
 0x8fe   : > { %s3154_s29 = sand.u32 1, %s5439_s13   ;;  %p5441_p6 = scmp.ne.s32.totalorder %s5440_s27, 0 }
 0x8ff   : > { %s3155_s3 = scalar_lea.sflag [#allocation8], %s3154_s29 }
 0x900   : > { %p3916_p11 = pnand %p3925_p4, %p5441_p6 }
 0x902   : > { %4305 = dma.done.wait (!%p3916_p11), %s3155_s3, 256  }
 0x903   : > { %4307 = vsyncadd (!%p3916_p11), %s3155_s3, 4294967040  ;;  %s34_s22 = sadd.s32 1, %s4346_s22   ;;  %s5442_s4 = sld [smem:[#allocation33_spill]] }
 0x904   : > { %p31_p0 = scmp.ge.s32.totalorder %s34_s22, 6   ;;  %s5443_s15 = sld [smem:[#allocation25_spill]] }
 0x905   : > { %s5444_s14 = sld [smem:[#allocation32_spill]]  ;;  %s5445_s26 = sld [smem:[#allocation29_spill]] }
 0x906   : > { %s5446_s24 = sld [smem:[#allocation30_spill]]  ;;  %s5447_s29 = smov %s4314_s30 }
 0x907   : > { %s5449_s16 = smov %s4326_s17  ;;  %s5451_s18 = smov %s4338_s20 }
 0x908   : > { %s5452_s19 = smov %s4342_s21  ;;  %33 = sbr.rel (!%p31_p0) target bundleno = 21 (0x15), region = 246 }
 0x909   : > { %s5448_s30 = smov %s5442_s4 }
 0x90b   : > { %s5450_s17 = smov %s5444_s14  ;;  %s5453_s20 = smov %s5445_s26 }
 0x90c   : > { %s5454_s21 = smov %s5446_s24 }
 0x90f   :  { %3160 = vsyncpa [#allocation7], 1 }
 0x910   :  { %3162 = vsyncpa [#allocation7 + $0x1], 1 }
 0x911   :  { %3163 = vsyncpa [#allocation10], 1 }
 0x912   :  { %3165 = vsyncpa [#allocation10 + $0x1], 1 }
 0x913   :  { %3166 = vsyncpa [#allocation15], 1 }
 0x914   :  { %3167 = vsyncpa [#allocation8], 1 }
 0x915   :  { %3169 = vsyncpa [#allocation8 + $0x1], 1 }

</bundles_post_ra>
